<compile_context>
chip_gen: v6e
topology: v6e:2x2x1
jax: 0.10.0
libtpu: 0.0.40
codegen_flags: <defaults>
</compile_context>

<pallas_src>
import functools

import numpy as np
import jax
import jax.numpy as jnp
from jax import lax
from jax.experimental import pallas as pl
from jax.experimental.pallas import tpu as pltpu


# ------------------------------ Pallas kernel -------------------------------

def _fused_block_kernel(C, Cin, S0, W2, MV, NB,
                        x_ref, skip_ref, upk_ref, w1_ref, wd_ref, w2_ref,
                        shift_ref, cmask_ref, out_ref, pbuf, slab, cat_buf):
    """Whole UpsampleDilatedResidualBlock for NB batch items.

    Layout: activations are (C, NB*S0) -- channels on sublanes, item b's
    flattened (2H, 2W) spatial grid on lanes [b*S0, (b+1)*S0).  `pbuf` is a
    (C, MV + NB*(S0+MV)) f32 staging buffer whose zero margins provide the
    implicit *vertical* zero padding for the dilated convs; *horizontal* zero
    padding is applied with the precomputed per-shift column masks.  `slab`
    is the (9C, NB*S0) bf16 im2col / concat staging buffer (one wide-K matmul
    per conv); `cat_buf` holds [x1|x2|x3] for the final 1x1 conv.
    """
    f32 = jnp.float32
    bf16 = jnp.bfloat16
    seg = S0 + MV

    # Re-zero only the NB+1 margin strips (they are never written elsewhere).
    zstrip = jnp.zeros((C, MV), f32)
    for k in range(NB + 1):
        pbuf[:, k * seg:k * seg + MV] = zstrip

    # Preload the horizontal zero-padding masks (one row per column shift).
    cmask = {dw: cmask_ref[dw + 3:dw + 4, :] for dw in range(-3, 4) if dw != 0}

    # ---- bilinear 2x upsample + [up|skip] staging (per item) ---------------
    for b in range(NB):
        up_b = jnp.dot(x_ref[b], upk_ref[...], preferred_element_type=f32)
        blk = jnp.concatenate([up_b, skip_ref[b].astype(f32)], axis=0)
        slab[0:2 * Cin, b * S0:(b + 1) * S0] = blk.astype(bf16)

    # ---- conv_1x1_1 + BN1: one (C, 2Cin) @ (2Cin, NB*S0) matmul ------------
    x0 = jnp.dot(w1_ref[...], slab[0:2 * Cin, :],
                 preferred_element_type=f32) + shift_ref[0]        # (C, NB*S0)

    def dilated_conv_bn(xin, d, conv_idx, bn_idx):
        # Stage the activation inside the zero-margin buffer (per item).
        for b in range(NB):
            off = MV + b * seg
            pbuf[:, off:off + S0] = xin[:, b * S0:(b + 1) * S0]
        # Build the (9C, NB*S0) im2col slab: one shifted+masked window copy
        # per tap per item (implicit vertical zero pad via the margins).
        for kh in range(3):
            for kw in range(3):
                dh, dw = (kh - 1) * d, (kw - 1) * d
                r = (kh * 3 + kw) * C
                for b in range(NB):
                    start = MV + b * seg + dh * W2 + dw
                    win = pbuf[:, start:start + S0]
                    if dw != 0:                    # horizontal zero padding
                        win = win * cmask[dw]
                    slab[r:r + C, b * S0:(b + 1) * S0] = win.astype(bf16)
        # Single wide-K matmul for the whole conv (f32 accumulation).
        acc = jnp.dot(wd_ref[conv_idx], slab[...],
                      preferred_element_type=f32)
        return acc + shift_ref[bn_idx]

    x1 = dilated_conv_bn(x0, 1, 0, 1)
    cat_buf[0:C, :] = x1.astype(bf16)
    x2 = dilated_conv_bn(x1, 2, 1, 2)
    cat_buf[C:2 * C, :] = x2.astype(bf16)
    x3 = dilated_conv_bn(x2, 3, 2, 3)
    cat_buf[2 * C:3 * C, :] = x3.astype(bf16)

    # ---- conv_1x1_2 + BN2 + residual: one (C, 3C) @ (3C, NB*S0) matmul -----
    y = jnp.dot(w2_ref[...], cat_buf[...],
                preferred_element_type=f32) + shift_ref[4] + x0
    for b in range(NB):
        out_ref[b] = y[:, b * S0:(b + 1) * S0].astype(out_ref.dtype)


# ------------------------------ glue helpers --------------------------------

def bn_fold(bn, eps=1e-5):
    gamma, beta, mean, var = bn
    scale = gamma / jnp.sqrt(var + eps)
    shift = beta - mean * scale
    return scale, shift


def _upsample2x_matrix(n):
    """Row-interpolation matrix matching F.interpolate(scale_factor=2,
    mode='bilinear', align_corners=False)."""
    U = np.zeros((2 * n, n), dtype=np.float32)
    for i in range(2 * n):
        src = max(0.5 * i - 0.25, 0.0)
        i0 = min(int(np.floor(src)), n - 1)
        lam = src - i0
        i1 = i0 + 1 if i0 < n - 1 else i0
        U[i, i0] += 1.0 - lam
        U[i, i1] += lam
    return U


def _pick_nb(N, S0, max_lanes=2048):
    """Largest divisor of N whose lane footprint (NB*S0) fits the target and
    that keeps the grid length even (v7x megacore: both TensorCores busy)."""
    best_even, best_any = 1, 1
    for nb in range(1, N + 1):
        if N % nb or nb * S0 > max_lanes:
            continue
        best_any = nb
        if (N // nb) % 2 == 0:
            best_even = nb
    return best_even if N % 2 == 0 else best_any


# -------------------------- module forward (NCHW API) -----------------------

def upsample_dilated_residual_block(params, inputs, skip_features):
    """inputs: (N, Cin, H, W); skip_features: (N, Cin, 2H, 2W)
    returns: (N, Cout, 2H, 2W)  (same semantics as the PyTorch module,
    eval-mode BatchNorm, bf16 MXU inputs / f32 accumulation)."""
    N, Cin, H, W = inputs.shape
    C = params['w1'].shape[1]
    H2, W2 = 2 * H, 2 * W
    S0 = H2 * W2                         # flattened per-item spatial (lanes)
    HW = H * W
    MV = -(-(3 * W2 + 3) // 128) * 128   # zero margin width, lane-aligned
    NB = _pick_nb(N, S0)                 # batch items per grid step
    assert N % NB == 0
    bf16 = jnp.bfloat16
    f32 = jnp.float32

    # ---- host-side layout glue (contiguous reshapes only) ------------------
    x3d = inputs.reshape(N, Cin, HW).astype(bf16)
    skip3d = skip_features.reshape(N, Cin, S0).astype(bf16)

    # Bilinear 2x upsample operator: up = x_flat @ kron(Uy, Ux)^T.
    Uy = _upsample2x_matrix(H)
    Ux = _upsample2x_matrix(W)
    upk = jnp.asarray(np.kron(Uy, Ux).T, dtype=bf16)            # (HW, S0)

    # Fold BatchNorm scales into the conv weights (f32 fold, then bf16 cast);
    # only the per-channel shift remains as an in-kernel epilogue.
    s1, b1 = bn_fold(params['bn1'])
    sds = [bn_fold(params[k]) for k in ('bn_d1', 'bn_d2', 'bn_d3')]
    s2, b2 = bn_fold(params['bn2'])

    w1f = (params['w1'].T * s1[:, None]).astype(bf16)           # (C, 2Cin)
    wdf = jnp.stack([
        jnp.transpose(params[k], (3, 0, 1, 2)).reshape(C, 9 * C)
        * sds[i][0][:, None]
        for i, k in enumerate(('wd1', 'wd2', 'wd3'))
    ]).astype(bf16)                                             # (3, C, 9C)
    w2f = (params['w2'].T * s2[:, None]).astype(bf16)           # (C, 3C)
    shifts = jnp.stack([b1, sds[0][1], sds[1][1], sds[2][1], b2]
                       ).reshape(5, C, 1).astype(f32)           # (5, C, 1)

    # Horizontal zero-padding masks per column shift dw in [-3, 3] (per item).
    cols = np.arange(S0) % W2
    cmask = np.stack([((cols + dw >= 0) & (cols + dw < W2)).astype(np.float32)
                      for dw in range(-3, 4)])                  # (7, S0)
    cmask = jnp.asarray(cmask)

    kernel = functools.partial(_fused_block_kernel, C, Cin, S0, W2, MV, NB)

    out = pl.pallas_call(
        kernel,
        out_shape=jax.ShapeDtypeStruct((N, C, S0), f32),
        grid=(N // NB,),
        in_specs=[
            pl.BlockSpec((NB, Cin, HW), lambda g: (g, 0, 0)),    # inputs
            pl.BlockSpec((NB, Cin, S0), lambda g: (g, 0, 0)),    # skip
            pl.BlockSpec((HW, S0), lambda g: (0, 0)),            # upsample op
            pl.BlockSpec((C, 2 * Cin), lambda g: (0, 0)),        # w1 (BN-folded)
            pl.BlockSpec((3, C, 9 * C), lambda g: (0, 0, 0)),    # wd (BN-folded)
            pl.BlockSpec((C, 3 * C), lambda g: (0, 0)),          # w2 (BN-folded)
            pl.BlockSpec((5, C, 1), lambda g: (0, 0, 0)),        # BN shifts
            pl.BlockSpec((7, S0), lambda g: (0, 0)),             # col masks
        ],
        out_specs=pl.BlockSpec((NB, C, S0), lambda g: (g, 0, 0)),
        scratch_shapes=[
            pltpu.VMEM((C, MV + NB * (S0 + MV)), f32),   # pbuf (zero margins)
            pltpu.VMEM((9 * C, NB * S0), bf16),          # im2col / [up|skip]
            pltpu.VMEM((3 * C, NB * S0), bf16),          # [x1|x2|x3] concat
        ],
        compiler_params=pltpu.CompilerParams(
            dimension_semantics=("parallel",),
            vmem_limit_bytes=8 * 1024 * 1024),
    )(x3d, skip3d, upk, w1f, wdf, w2f, shifts, cmask)

    return out.reshape(N, C, H2, W2)


# ------------------------------ parameter init -------------------------------

def init_params(key, inp_channels, out_channels):
    cin = inp_channels * 2
    C = out_channels
    ks = jax.random.split(key, 10)

    def conv_w(k, shape):
        return jax.random.normal(k, shape, jnp.float32) * 0.1

    def bn(k, c):
        k1, k2, k3, k4 = jax.random.split(k, 4)
        gamma = jax.random.uniform(k1, (c,), jnp.float32, 0.5, 1.5)
        beta = jax.random.normal(k2, (c,), jnp.float32) * 0.1
        mean = jax.random.normal(k3, (c,), jnp.float32) * 0.1
        var = jax.random.uniform(k4, (c,), jnp.float32, 0.5, 1.5)
        return (gamma, beta, mean, var)

    return {
        'w1': conv_w(ks[0], (cin, C)),            # conv_1x1_1 (Cin, Cout)
        'bn1': bn(ks[1], C),
        'wd1': conv_w(ks[2], (3, 3, C, C)),       # conv_d1 (HWIO)
        'bn_d1': bn(ks[3], C),
        'wd2': conv_w(ks[4], (3, 3, C, C)),       # conv_d2 (HWIO)
        'bn_d2': bn(ks[5], C),
        'wd3': conv_w(ks[6], (3, 3, C, C)),       # conv_d3 (HWIO)
        'bn_d3': bn(ks[7], C),
        'w2': conv_w(ks[8], (3 * C, C)),          # conv_1x1_2
        'bn2': bn(ks[9], C),
    }


# -------------------------------- pure-JAX ref -------------------------------

def _reference_forward(params, inputs, skip):
    N, C, H, W = inputs.shape
    Uy = jnp.asarray(_upsample2x_matrix(H))
    Ux = jnp.asarray(_upsample2x_matrix(W))
    up = jnp.einsum('ph,nchw->ncpw', Uy, inputs)
    up = jnp.einsum('qw,ncpw->ncpq', Ux, up)
    x = jnp.concatenate([up, skip], axis=1)
    x = jnp.transpose(x, (0, 2, 3, 1))

    def bn_apply(y, bn):
        s, b = bn_fold(bn)
        return y * s + b

    def conv1x1(y, w):
        return jnp.einsum('nhwc,cd->nhwd', y, w)

    def conv3x3(y, w, d):
        return lax.conv_general_dilated(
            y, w, window_strides=(1, 1), padding=((d, d), (d, d)),
            rhs_dilation=(d, d), dimension_numbers=('NHWC', 'HWIO', 'NHWC'))

    x0 = bn_apply(conv1x1(x, params['w1']), params['bn1'])
    x1 = bn_apply(conv3x3(x0, params['wd1'], 1), params['bn_d1'])
    x2 = bn_apply(conv3x3(x1, params['wd2'], 2), params['bn_d2'])
    x3 = bn_apply(conv3x3(x2, params['wd3'], 3), params['bn_d3'])
    cat = jnp.concatenate([x1, x2, x3], axis=-1)
    out = bn_apply(conv1x1(cat, params['w2']), params['bn2']) + x0
    return jnp.transpose(out, (0, 3, 1, 2))


# ------------------------------------ main -----------------------------------

if __name__ == "__main__":
    key = jax.random.PRNGKey(0)
    k_p, k_x, k_s = jax.random.split(key, 3)

    inp_channels, out_channels = 4, 8
    N, H, W = 4, 8, 8                               # inputs get 2x upsampled
    inputs = jax.random.normal(k_x, (N, inp_channels, H, W), jnp.float32)
    skip = jax.random.normal(k_s, (N, inp_channels, 2 * H, 2 * W), jnp.float32)
    params = init_params(k_p, inp_channels, out_channels)

    out = jax.jit(upsample_dilated_residual_block)(params, inputs, skip)
    out = jax.block_until_ready(out)
    assert out.shape == (N, out_channels, 2 * H, 2 * W)

    # Kernel uses bf16 MXU inputs (with BN scale folded into bf16 weights)
    # and f32 accumulation; reference is pure f32 -> bf16-level tolerance.
    ref = _reference_forward(params, inputs, skip)
    np.testing.assert_allclose(np.asarray(out), np.asarray(ref),
                               atol=4e-2, rtol=4e-2)
    print("KERNEL_OK")
</pallas_src>

<mosaic_0001>
module attributes {stable_mosaic.version = 11 : i64} {
  func.func @_fused_block_kernel(%arg0: i32, %arg1: memref<2x4x64xbf16, #tpu.memory_space<vmem>>, %arg2: memref<2x4x256xbf16, #tpu.memory_space<vmem>>, %arg3: memref<64x256xbf16, #tpu.memory_space<vmem>>, %arg4: memref<8x8xbf16, #tpu.memory_space<vmem>>, %arg5: memref<3x8x72xbf16, #tpu.memory_space<vmem>>, %arg6: memref<8x24xbf16, #tpu.memory_space<vmem>>, %arg7: memref<5x8x1xf32, #tpu.memory_space<vmem>>, %arg8: memref<7x256xf32, #tpu.memory_space<vmem>>, %arg9: memref<2x8x256xf32, #tpu.memory_space<vmem>>, %arg10: memref<8x896xf32, #tpu.memory_space<vmem>>, %arg11: memref<72x512xbf16, #tpu.memory_space<vmem>>, %arg12: memref<24x512xbf16, #tpu.memory_space<vmem>>) attributes {dimension_semantics = [#tpu.dimension_semantics<parallel>], iteration_bounds = array<i64: 2>, scalar_prefetch = 0 : i64, scratch_operands = 3 : i64, tpu.core_type = #tpu.core_type<tc>, window_params = [{transform_indices = @transform_0, window_bounds = array<i64: 2, 4, 64>}, {transform_indices = @transform_1, window_bounds = array<i64: 2, 4, 256>}, {pipeline_mode = #tpu.pipeline_mode<synchronous>, transform_indices = @transform_2, window_bounds = array<i64: 64, 256>}, {pipeline_mode = #tpu.pipeline_mode<synchronous>, transform_indices = @transform_3, window_bounds = array<i64: 8, 8>}, {pipeline_mode = #tpu.pipeline_mode<synchronous>, transform_indices = @transform_4, window_bounds = array<i64: 3, 8, 72>}, {pipeline_mode = #tpu.pipeline_mode<synchronous>, transform_indices = @transform_5, window_bounds = array<i64: 8, 24>}, {pipeline_mode = #tpu.pipeline_mode<synchronous>, transform_indices = @transform_6, window_bounds = array<i64: 5, 8, 1>}, {pipeline_mode = #tpu.pipeline_mode<synchronous>, transform_indices = @transform_7, window_bounds = array<i64: 7, 256>}, {transform_indices = @transform_8, window_bounds = array<i64: 2, 8, 256>}]} {
    %cst = arith.constant 0.000000e+00 : f32
    %0 = vector.broadcast %cst : f32 to vector<8x128xf32>
    %c0 = arith.constant 0 : index
    %c0_0 = arith.constant 0 : index
    %1 = vector.load %arg10[%c0, %c0_0] : memref<8x896xf32, #tpu.memory_space<vmem>>, vector<8x128xf32>
    tpu.vector_store %arg10[%c0, %c0_0], %0 {strides = array<i32>} : memref<8x896xf32, #tpu.memory_space<vmem>>, vector<8x128xf32>,
    %c0_1 = arith.constant 0 : index
    %c384 = arith.constant 384 : index
    %2 = vector.load %arg10[%c0_1, %c384] : memref<8x896xf32, #tpu.memory_space<vmem>>, vector<8x128xf32>
    tpu.vector_store %arg10[%c0_1, %c384], %0 {strides = array<i32>} : memref<8x896xf32, #tpu.memory_space<vmem>>, vector<8x128xf32>,
    %c0_2 = arith.constant 0 : index
    %c768 = arith.constant 768 : index
    %3 = vector.load %arg10[%c0_2, %c768] : memref<8x896xf32, #tpu.memory_space<vmem>>, vector<8x128xf32>
    tpu.vector_store %arg10[%c0_2, %c768], %0 {strides = array<i32>} : memref<8x896xf32, #tpu.memory_space<vmem>>, vector<8x128xf32>,
    %c0_3 = arith.constant 0 : index
    %c0_4 = arith.constant 0 : index
    %4 = vector.load %arg8[%c0_3, %c0_4] : memref<7x256xf32, #tpu.memory_space<vmem>>, vector<1x256xf32>
    %c1 = arith.constant 1 : index
    %c0_5 = arith.constant 0 : index
    %5 = vector.load %arg8[%c1, %c0_5] : memref<7x256xf32, #tpu.memory_space<vmem>>, vector<1x256xf32>
    %c2 = arith.constant 2 : index
    %c0_6 = arith.constant 0 : index
    %6 = vector.load %arg8[%c2, %c0_6] : memref<7x256xf32, #tpu.memory_space<vmem>>, vector<1x256xf32>
    %c4 = arith.constant 4 : index
    %c0_7 = arith.constant 0 : index
    %7 = vector.load %arg8[%c4, %c0_7] : memref<7x256xf32, #tpu.memory_space<vmem>>, vector<1x256xf32>
    %c5 = arith.constant 5 : index
    %c0_8 = arith.constant 0 : index
    %8 = vector.load %arg8[%c5, %c0_8] : memref<7x256xf32, #tpu.memory_space<vmem>>, vector<1x256xf32>
    %c6 = arith.constant 6 : index
    %c0_9 = arith.constant 0 : index
    %9 = vector.load %arg8[%c6, %c0_9] : memref<7x256xf32, #tpu.memory_space<vmem>>, vector<1x256xf32>
    %c0_10 = arith.constant 0 : index
    %c0_11 = arith.constant 0 : index
    %c0_12 = arith.constant 0 : index
    %10 = vector.load %arg1[%c0_10, %c0_11, %c0_12] : memref<2x4x64xbf16, #tpu.memory_space<vmem>>, vector<1x4x64xbf16>
    %11 = vector.shape_cast %10 : vector<1x4x64xbf16> to vector<4x64xbf16>
    %c0_13 = arith.constant 0 : index
    %c0_14 = arith.constant 0 : index
    %12 = vector.load %arg3[%c0_13, %c0_14] : memref<64x256xbf16, #tpu.memory_space<vmem>>, vector<64x256xbf16>
    %cst_15 = arith.constant dense<0.000000e+00> : vector<4x256xf32>
    %13 = tpu.matmul %11, %12, %cst_15 {dimension_numbers = #tpu.dot_dimension_numbers<[1], [0], [0], [1], [0, 0, 1, 1], [], []>} : vector<4x64xbf16>, vector<64x256xbf16>, vector<4x256xf32> -> vector<4x256xf32>
    %c0_16 = arith.constant 0 : index
    %c0_17 = arith.constant 0 : index
    %c0_18 = arith.constant 0 : index
    %14 = vector.load %arg2[%c0_16, %c0_17, %c0_18] : memref<2x4x256xbf16, #tpu.memory_space<vmem>>, vector<1x4x256xbf16>
    %15 = vector.shape_cast %14 : vector<1x4x256xbf16> to vector<4x256xbf16>
    %16 = arith.extf %15 : vector<4x256xbf16> to vector<4x256xf32>
    %17 = tpu.concatenate %13, %16 in 0 : vector<4x256xf32>, vector<4x256xf32> -> vector<8x256xf32>
    %18 = arith.truncf %17 : vector<8x256xf32> to vector<8x256xbf16>
    %c0_19 = arith.constant 0 : index
    %c0_20 = arith.constant 0 : index
    %19 = vector.load %arg11[%c0_19, %c0_20] : memref<72x512xbf16, #tpu.memory_space<vmem>>, vector<8x256xbf16>
    tpu.vector_store %arg11[%c0_19, %c0_20], %18 {strides = array<i32>} : memref<72x512xbf16, #tpu.memory_space<vmem>>, vector<8x256xbf16>,
    %c1_21 = arith.constant 1 : index
    %c0_22 = arith.constant 0 : index
    %c0_23 = arith.constant 0 : index
    %20 = vector.load %arg1[%c1_21, %c0_22, %c0_23] : memref<2x4x64xbf16, #tpu.memory_space<vmem>>, vector<1x4x64xbf16>
    %21 = vector.shape_cast %20 : vector<1x4x64xbf16> to vector<4x64xbf16>
    %c0_24 = arith.constant 0 : index
    %c0_25 = arith.constant 0 : index
    %22 = vector.load %arg3[%c0_24, %c0_25] : memref<64x256xbf16, #tpu.memory_space<vmem>>, vector<64x256xbf16>
    %cst_26 = arith.constant dense<0.000000e+00> : vector<4x256xf32>
    %23 = tpu.matmul %21, %22, %cst_26 {dimension_numbers = #tpu.dot_dimension_numbers<[1], [0], [0], [1], [0, 0, 1, 1], [], []>} : vector<4x64xbf16>, vector<64x256xbf16>, vector<4x256xf32> -> vector<4x256xf32>
    %c1_27 = arith.constant 1 : index
    %c0_28 = arith.constant 0 : index
    %c0_29 = arith.constant 0 : index
    %24 = vector.load %arg2[%c1_27, %c0_28, %c0_29] : memref<2x4x256xbf16, #tpu.memory_space<vmem>>, vector<1x4x256xbf16>
    %25 = vector.shape_cast %24 : vector<1x4x256xbf16> to vector<4x256xbf16>
    %26 = arith.extf %25 : vector<4x256xbf16> to vector<4x256xf32>
    %27 = tpu.concatenate %23, %26 in 0 : vector<4x256xf32>, vector<4x256xf32> -> vector<8x256xf32>
    %28 = arith.truncf %27 : vector<8x256xf32> to vector<8x256xbf16>
    %c0_30 = arith.constant 0 : index
    %c256 = arith.constant 256 : index
    %29 = vector.load %arg11[%c0_30, %c256] : memref<72x512xbf16, #tpu.memory_space<vmem>>, vector<8x256xbf16>
    tpu.vector_store %arg11[%c0_30, %c256], %28 {strides = array<i32>} : memref<72x512xbf16, #tpu.memory_space<vmem>>, vector<8x256xbf16>,
    %c0_31 = arith.constant 0 : index
    %c0_32 = arith.constant 0 : index
    %30 = vector.load %arg4[%c0_31, %c0_32] : memref<8x8xbf16, #tpu.memory_space<vmem>>, vector<8x8xbf16>
    %c0_33 = arith.constant 0 : index
    %c0_34 = arith.constant 0 : index
    %31 = vector.load %arg11[%c0_33, %c0_34] : memref<72x512xbf16, #tpu.memory_space<vmem>>, vector<8x512xbf16>
    %cst_35 = arith.constant dense<0.000000e+00> : vector<8x512xf32>
    %32 = tpu.matmul %30, %31, %cst_35 {dimension_numbers = #tpu.dot_dimension_numbers<[1], [0], [0], [1], [0, 0, 1, 1], [], []>} : vector<8x8xbf16>, vector<8x512xbf16>, vector<8x512xf32> -> vector<8x512xf32>
    %c0_36 = arith.constant 0 : index
    %c0_37 = arith.constant 0 : index
    %c0_38 = arith.constant 0 : index
    %33 = vector.load %arg7[%c0_36, %c0_37, %c0_38] : memref<5x8x1xf32, #tpu.memory_space<vmem>>, vector<1x8x1xf32>
    %34 = vector.shape_cast %33 : vector<1x8x1xf32> to vector<8x1xf32>
    %35 = vector.broadcast %34 : vector<8x1xf32> to vector<8x512xf32>
    %36 = arith.addf %32, %35 : vector<8x512xf32>
    %37 = vector.extract_strided_slice %36 {offsets = [0, 0], sizes = [8, 256], strides = [1, 1]} : vector<8x512xf32> to vector<8x256xf32>
    %c0_39 = arith.constant 0 : index
    %c128 = arith.constant 128 : index
    %38 = vector.load %arg10[%c0_39, %c128] : memref<8x896xf32, #tpu.memory_space<vmem>>, vector<8x256xf32>
    tpu.vector_store %arg10[%c0_39, %c128], %37 {strides = array<i32>} : memref<8x896xf32, #tpu.memory_space<vmem>>, vector<8x256xf32>,
    %39 = vector.extract_strided_slice %36 {offsets = [0, 256], sizes = [8, 256], strides = [1, 1]} : vector<8x512xf32> to vector<8x256xf32>
    %c0_40 = arith.constant 0 : index
    %c512 = arith.constant 512 : index
    %40 = vector.load %arg10[%c0_40, %c512] : memref<8x896xf32, #tpu.memory_space<vmem>>, vector<8x256xf32>
    tpu.vector_store %arg10[%c0_40, %c512], %39 {strides = array<i32>} : memref<8x896xf32, #tpu.memory_space<vmem>>, vector<8x256xf32>,
    %c0_41 = arith.constant 0 : index
    %c111 = arith.constant 111 : index
    %41 = vector.load %arg10[%c0_41, %c111] : memref<8x896xf32, #tpu.memory_space<vmem>>, vector<8x256xf32>
    %42 = vector.broadcast %6 : vector<1x256xf32> to vector<8x256xf32>
    %43 = arith.mulf %41, %42 : vector<8x256xf32>
    %44 = arith.truncf %43 : vector<8x256xf32> to vector<8x256xbf16>
    %c0_42 = arith.constant 0 : index
    %c0_43 = arith.constant 0 : index
    %45 = vector.load %arg11[%c0_42, %c0_43] : memref<72x512xbf16, #tpu.memory_space<vmem>>, vector<8x256xbf16>
    tpu.vector_store %arg11[%c0_42, %c0_43], %44 {strides = array<i32>} : memref<72x512xbf16, #tpu.memory_space<vmem>>, vector<8x256xbf16>,
    %c0_44 = arith.constant 0 : index
    %c495 = arith.constant 495 : index
    %46 = vector.load %arg10[%c0_44, %c495] : memref<8x896xf32, #tpu.memory_space<vmem>>, vector<8x256xf32>
    %47 = vector.broadcast %6 : vector<1x256xf32> to vector<8x256xf32>
    %48 = arith.mulf %46, %47 : vector<8x256xf32>
    %49 = arith.truncf %48 : vector<8x256xf32> to vector<8x256xbf16>
    %c0_45 = arith.constant 0 : index
    %c256_46 = arith.constant 256 : index
    %50 = vector.load %arg11[%c0_45, %c256_46] : memref<72x512xbf16, #tpu.memory_space<vmem>>, vector<8x256xbf16>
    tpu.vector_store %arg11[%c0_45, %c256_46], %49 {strides = array<i32>} : memref<72x512xbf16, #tpu.memory_space<vmem>>, vector<8x256xbf16>,
    %c0_47 = arith.constant 0 : index
    %c112 = arith.constant 112 : index
    %51 = vector.load %arg10[%c0_47, %c112] : memref<8x896xf32, #tpu.memory_space<vmem>>, vector<8x256xf32>
    %52 = arith.truncf %51 : vector<8x256xf32> to vector<8x256xbf16>
    %c8 = arith.constant 8 : index
    %c0_48 = arith.constant 0 : index
    %53 = vector.load %arg11[%c8, %c0_48] : memref<72x512xbf16, #tpu.memory_space<vmem>>, vector<8x256xbf16>
    tpu.vector_store %arg11[%c8, %c0_48], %52 {strides = array<i32>} : memref<72x512xbf16, #tpu.memory_space<vmem>>, vector<8x256xbf16>,
    %c0_49 = arith.constant 0 : index
    %c496 = arith.constant 496 : index
    %54 = vector.load %arg10[%c0_49, %c496] : memref<8x896xf32, #tpu.memory_space<vmem>>, vector<8x256xf32>
    %55 = arith.truncf %54 : vector<8x256xf32> to vector<8x256xbf16>
    %c8_50 = arith.constant 8 : index
    %c256_51 = arith.constant 256 : index
    %56 = vector.load %arg11[%c8_50, %c256_51] : memref<72x512xbf16, #tpu.memory_space<vmem>>, vector<8x256xbf16>
    tpu.vector_store %arg11[%c8_50, %c256_51], %55 {strides = array<i32>} : memref<72x512xbf16, #tpu.memory_space<vmem>>, vector<8x256xbf16>,
    %c0_52 = arith.constant 0 : index
    %c113 = arith.constant 113 : index
    %57 = vector.load %arg10[%c0_52, %c113] : memref<8x896xf32, #tpu.memory_space<vmem>>, vector<8x256xf32>
    %58 = vector.broadcast %7 : vector<1x256xf32> to vector<8x256xf32>
    %59 = arith.mulf %57, %58 : vector<8x256xf32>
    %60 = arith.truncf %59 : vector<8x256xf32> to vector<8x256xbf16>
    %c16 = arith.constant 16 : index
    %c0_53 = arith.constant 0 : index
    %61 = vector.load %arg11[%c16, %c0_53] : memref<72x512xbf16, #tpu.memory_space<vmem>>, vector<8x256xbf16>
    tpu.vector_store %arg11[%c16, %c0_53], %60 {strides = array<i32>} : memref<72x512xbf16, #tpu.memory_space<vmem>>, vector<8x256xbf16>,
    %c0_54 = arith.constant 0 : index
    %c497 = arith.constant 497 : index
    %62 = vector.load %arg10[%c0_54, %c497] : memref<8x896xf32, #tpu.memory_space<vmem>>, vector<8x256xf32>
    %63 = vector.broadcast %7 : vector<1x256xf32> to vector<8x256xf32>
    %64 = arith.mulf %62, %63 : vector<8x256xf32>
    %65 = arith.truncf %64 : vector<8x256xf32> to vector<8x256xbf16>
    %c16_55 = arith.constant 16 : index
    %c256_56 = arith.constant 256 : index
    %66 = vector.load %arg11[%c16_55, %c256_56] : memref<72x512xbf16, #tpu.memory_space<vmem>>, vector<8x256xbf16>
    tpu.vector_store %arg11[%c16_55, %c256_56], %65 {strides = array<i32>} : memref<72x512xbf16, #tpu.memory_space<vmem>>, vector<8x256xbf16>,
    %c0_57 = arith.constant 0 : index
    %c127 = arith.constant 127 : index
    %67 = vector.load %arg10[%c0_57, %c127] : memref<8x896xf32, #tpu.memory_space<vmem>>, vector<8x256xf32>
    %68 = vector.broadcast %6 : vector<1x256xf32> to vector<8x256xf32>
    %69 = arith.mulf %67, %68 : vector<8x256xf32>
    %70 = arith.truncf %69 : vector<8x256xf32> to vector<8x256xbf16>
    %c24 = arith.constant 24 : index
    %c0_58 = arith.constant 0 : index
    %71 = vector.load %arg11[%c24, %c0_58] : memref<72x512xbf16, #tpu.memory_space<vmem>>, vector<8x256xbf16>
    tpu.vector_store %arg11[%c24, %c0_58], %70 {strides = array<i32>} : memref<72x512xbf16, #tpu.memory_space<vmem>>, vector<8x256xbf16>,
    %c0_59 = arith.constant 0 : index
    %c511 = arith.constant 511 : index
    %72 = vector.load %arg10[%c0_59, %c511] : memref<8x896xf32, #tpu.memory_space<vmem>>, vector<8x256xf32>
    %73 = vector.broadcast %6 : vector<1x256xf32> to vector<8x256xf32>
    %74 = arith.mulf %72, %73 : vector<8x256xf32>
    %75 = arith.truncf %74 : vector<8x256xf32> to vector<8x256xbf16>
    %c24_60 = arith.constant 24 : index
    %c256_61 = arith.constant 256 : index
    %76 = vector.load %arg11[%c24_60, %c256_61] : memref<72x512xbf16, #tpu.memory_space<vmem>>, vector<8x256xbf16>
    tpu.vector_store %arg11[%c24_60, %c256_61], %75 {strides = array<i32>} : memref<72x512xbf16, #tpu.memory_space<vmem>>, vector<8x256xbf16>,
    %c0_62 = arith.constant 0 : index
    %c128_63 = arith.constant 128 : index
    %77 = vector.load %arg10[%c0_62, %c128_63] : memref<8x896xf32, #tpu.memory_space<vmem>>, vector<8x256xf32>
    %78 = arith.truncf %77 : vector<8x256xf32> to vector<8x256xbf16>
    %c32 = arith.constant 32 : index
    %c0_64 = arith.constant 0 : index
    %79 = vector.load %arg11[%c32, %c0_64] : memref<72x512xbf16, #tpu.memory_space<vmem>>, vector<8x256xbf16>
    tpu.vector_store %arg11[%c32, %c0_64], %78 {strides = array<i32>} : memref<72x512xbf16, #tpu.memory_space<vmem>>, vector<8x256xbf16>,
    %c0_65 = arith.constant 0 : index
    %c512_66 = arith.constant 512 : index
    %80 = vector.load %arg10[%c0_65, %c512_66] : memref<8x896xf32, #tpu.memory_space<vmem>>, vector<8x256xf32>
    %81 = arith.truncf %80 : vector<8x256xf32> to vector<8x256xbf16>
    %c32_67 = arith.constant 32 : index
    %c256_68 = arith.constant 256 : index
    %82 = vector.load %arg11[%c32_67, %c256_68] : memref<72x512xbf16, #tpu.memory_space<vmem>>, vector<8x256xbf16>
    tpu.vector_store %arg11[%c32_67, %c256_68], %81 {strides = array<i32>} : memref<72x512xbf16, #tpu.memory_space<vmem>>, vector<8x256xbf16>,
    %c0_69 = arith.constant 0 : index
    %c129 = arith.constant 129 : index
    %83 = vector.load %arg10[%c0_69, %c129] : memref<8x896xf32, #tpu.memory_space<vmem>>, vector<8x256xf32>
    %84 = vector.broadcast %7 : vector<1x256xf32> to vector<8x256xf32>
    %85 = arith.mulf %83, %84 : vector<8x256xf32>
    %86 = arith.truncf %85 : vector<8x256xf32> to vector<8x256xbf16>
    %c40 = arith.constant 40 : index
    %c0_70 = arith.constant 0 : index
    %87 = vector.load %arg11[%c40, %c0_70] : memref<72x512xbf16, #tpu.memory_space<vmem>>, vector<8x256xbf16>
    tpu.vector_store %arg11[%c40, %c0_70], %86 {strides = array<i32>} : memref<72x512xbf16, #tpu.memory_space<vmem>>, vector<8x256xbf16>,
    %c0_71 = arith.constant 0 : index
    %c513 = arith.constant 513 : index
    %88 = vector.load %arg10[%c0_71, %c513] : memref<8x896xf32, #tpu.memory_space<vmem>>, vector<8x256xf32>
    %89 = vector.broadcast %7 : vector<1x256xf32> to vector<8x256xf32>
    %90 = arith.mulf %88, %89 : vector<8x256xf32>
    %91 = arith.truncf %90 : vector<8x256xf32> to vector<8x256xbf16>
    %c40_72 = arith.constant 40 : index
    %c256_73 = arith.constant 256 : index
    %92 = vector.load %arg11[%c40_72, %c256_73] : memref<72x512xbf16, #tpu.memory_space<vmem>>, vector<8x256xbf16>
    tpu.vector_store %arg11[%c40_72, %c256_73], %91 {strides = array<i32>} : memref<72x512xbf16, #tpu.memory_space<vmem>>, vector<8x256xbf16>,
    %c0_74 = arith.constant 0 : index
    %c143 = arith.constant 143 : index
    %93 = vector.load %arg10[%c0_74, %c143] : memref<8x896xf32, #tpu.memory_space<vmem>>, vector<8x256xf32>
    %94 = vector.broadcast %6 : vector<1x256xf32> to vector<8x256xf32>
    %95 = arith.mulf %93, %94 : vector<8x256xf32>
    %96 = arith.truncf %95 : vector<8x256xf32> to vector<8x256xbf16>
    %c48 = arith.constant 48 : index
    %c0_75 = arith.constant 0 : index
    %97 = vector.load %arg11[%c48, %c0_75] : memref<72x512xbf16, #tpu.memory_space<vmem>>, vector<8x256xbf16>
    tpu.vector_store %arg11[%c48, %c0_75], %96 {strides = array<i32>} : memref<72x512xbf16, #tpu.memory_space<vmem>>, vector<8x256xbf16>,
    %c0_76 = arith.constant 0 : index
    %c527 = arith.constant 527 : index
    %98 = vector.load %arg10[%c0_76, %c527] : memref<8x896xf32, #tpu.memory_space<vmem>>, vector<8x256xf32>
    %99 = vector.broadcast %6 : vector<1x256xf32> to vector<8x256xf32>
    %100 = arith.mulf %98, %99 : vector<8x256xf32>
    %101 = arith.truncf %100 : vector<8x256xf32> to vector<8x256xbf16>
    %c48_77 = arith.constant 48 : index
    %c256_78 = arith.constant 256 : index
    %102 = vector.load %arg11[%c48_77, %c256_78] : memref<72x512xbf16, #tpu.memory_space<vmem>>, vector<8x256xbf16>
    tpu.vector_store %arg11[%c48_77, %c256_78], %101 {strides = array<i32>} : memref<72x512xbf16, #tpu.memory_space<vmem>>, vector<8x256xbf16>,
    %c0_79 = arith.constant 0 : index
    %c144 = arith.constant 144 : index
    %103 = vector.load %arg10[%c0_79, %c144] : memref<8x896xf32, #tpu.memory_space<vmem>>, vector<8x256xf32>
    %104 = arith.truncf %103 : vector<8x256xf32> to vector<8x256xbf16>
    %c56 = arith.constant 56 : index
    %c0_80 = arith.constant 0 : index
    %105 = vector.load %arg11[%c56, %c0_80] : memref<72x512xbf16, #tpu.memory_space<vmem>>, vector<8x256xbf16>
    tpu.vector_store %arg11[%c56, %c0_80], %104 {strides = array<i32>} : memref<72x512xbf16, #tpu.memory_space<vmem>>, vector<8x256xbf16>,
    %c0_81 = arith.constant 0 : index
    %c528 = arith.constant 528 : index
    %106 = vector.load %arg10[%c0_81, %c528] : memref<8x896xf32, #tpu.memory_space<vmem>>, vector<8x256xf32>
    %107 = arith.truncf %106 : vector<8x256xf32> to vector<8x256xbf16>
    %c56_82 = arith.constant 56 : index
    %c256_83 = arith.constant 256 : index
    %108 = vector.load %arg11[%c56_82, %c256_83] : memref<72x512xbf16, #tpu.memory_space<vmem>>, vector<8x256xbf16>
    tpu.vector_store %arg11[%c56_82, %c256_83], %107 {strides = array<i32>} : memref<72x512xbf16, #tpu.memory_space<vmem>>, vector<8x256xbf16>,
    %c0_84 = arith.constant 0 : index
    %c145 = arith.constant 145 : index
    %109 = vector.load %arg10[%c0_84, %c145] : memref<8x896xf32, #tpu.memory_space<vmem>>, vector<8x256xf32>
    %110 = vector.broadcast %7 : vector<1x256xf32> to vector<8x256xf32>
    %111 = arith.mulf %109, %110 : vector<8x256xf32>
    %112 = arith.truncf %111 : vector<8x256xf32> to vector<8x256xbf16>
    %c64 = arith.constant 64 : index
    %c0_85 = arith.constant 0 : index
    %113 = vector.load %arg11[%c64, %c0_85] : memref<72x512xbf16, #tpu.memory_space<vmem>>, vector<8x256xbf16>
    tpu.vector_store %arg11[%c64, %c0_85], %112 {strides = array<i32>} : memref<72x512xbf16, #tpu.memory_space<vmem>>, vector<8x256xbf16>,
    %c0_86 = arith.constant 0 : index
    %c529 = arith.constant 529 : index
    %114 = vector.load %arg10[%c0_86, %c529] : memref<8x896xf32, #tpu.memory_space<vmem>>, vector<8x256xf32>
    %115 = vector.broadcast %7 : vector<1x256xf32> to vector<8x256xf32>
    %116 = arith.mulf %114, %115 : vector<8x256xf32>
    %117 = arith.truncf %116 : vector<8x256xf32> to vector<8x256xbf16>
    %c64_87 = arith.constant 64 : index
    %c256_88 = arith.constant 256 : index
    %118 = vector.load %arg11[%c64_87, %c256_88] : memref<72x512xbf16, #tpu.memory_space<vmem>>, vector<8x256xbf16>
    tpu.vector_store %arg11[%c64_87, %c256_88], %117 {strides = array<i32>} : memref<72x512xbf16, #tpu.memory_space<vmem>>, vector<8x256xbf16>,
    %c0_89 = arith.constant 0 : index
    %c0_90 = arith.constant 0 : index
    %c0_91 = arith.constant 0 : index
    %119 = vector.load %arg5[%c0_89, %c0_90, %c0_91] : memref<3x8x72xbf16, #tpu.memory_space<vmem>>, vector<1x8x72xbf16>
    %120 = vector.shape_cast %119 : vector<1x8x72xbf16> to vector<8x72xbf16>
    %c0_92 = arith.constant 0 : index
    %c0_93 = arith.constant 0 : index
    %121 = vector.load %arg11[%c0_92, %c0_93] : memref<72x512xbf16, #tpu.memory_space<vmem>>, vector<72x512xbf16>
    %cst_94 = arith.constant dense<0.000000e+00> : vector<8x512xf32>
    %122 = tpu.matmul %120, %121, %cst_94 {dimension_numbers = #tpu.dot_dimension_numbers<[1], [0], [0], [1], [0, 0, 1, 1], [], []>} : vector<8x72xbf16>, vector<72x512xbf16>, vector<8x512xf32> -> vector<8x512xf32>
    %c1_95 = arith.constant 1 : index
    %c0_96 = arith.constant 0 : index
    %c0_97 = arith.constant 0 : index
    %123 = vector.load %arg7[%c1_95, %c0_96, %c0_97] : memref<5x8x1xf32, #tpu.memory_space<vmem>>, vector<1x8x1xf32>
    %124 = vector.shape_cast %123 : vector<1x8x1xf32> to vector<8x1xf32>
    %125 = vector.broadcast %124 : vector<8x1xf32> to vector<8x512xf32>
    %126 = arith.addf %122, %125 : vector<8x512xf32>
    %127 = arith.truncf %126 : vector<8x512xf32> to vector<8x512xbf16>
    %c0_98 = arith.constant 0 : index
    %c0_99 = arith.constant 0 : index
    %128 = vector.load %arg12[%c0_98, %c0_99] : memref<24x512xbf16, #tpu.memory_space<vmem>>, vector<8x512xbf16>
    tpu.vector_store %arg12[%c0_98, %c0_99], %127 {strides = array<i32>} : memref<24x512xbf16, #tpu.memory_space<vmem>>, vector<8x512xbf16>,
    %129 = vector.extract_strided_slice %126 {offsets = [0, 0], sizes = [8, 256], strides = [1, 1]} : vector<8x512xf32> to vector<8x256xf32>
    %c0_100 = arith.constant 0 : index
    %c128_101 = arith.constant 128 : index
    %130 = vector.load %arg10[%c0_100, %c128_101] : memref<8x896xf32, #tpu.memory_space<vmem>>, vector<8x256xf32>
    tpu.vector_store %arg10[%c0_100, %c128_101], %129 {strides = array<i32>} : memref<8x896xf32, #tpu.memory_space<vmem>>, vector<8x256xf32>,
    %131 = vector.extract_strided_slice %126 {offsets = [0, 256], sizes = [8, 256], strides = [1, 1]} : vector<8x512xf32> to vector<8x256xf32>
    %c0_102 = arith.constant 0 : index
    %c512_103 = arith.constant 512 : index
    %132 = vector.load %arg10[%c0_102, %c512_103] : memref<8x896xf32, #tpu.memory_space<vmem>>, vector<8x256xf32>
    tpu.vector_store %arg10[%c0_102, %c512_103], %131 {strides = array<i32>} : memref<8x896xf32, #tpu.memory_space<vmem>>, vector<8x256xf32>,
    %c0_104 = arith.constant 0 : index
    %c94 = arith.constant 94 : index
    %133 = vector.load %arg10[%c0_104, %c94] : memref<8x896xf32, #tpu.memory_space<vmem>>, vector<8x256xf32>
    %134 = vector.broadcast %5 : vector<1x256xf32> to vector<8x256xf32>
    %135 = arith.mulf %133, %134 : vector<8x256xf32>
    %136 = arith.truncf %135 : vector<8x256xf32> to vector<8x256xbf16>
    %c0_105 = arith.constant 0 : index
    %c0_106 = arith.constant 0 : index
    %137 = vector.load %arg11[%c0_105, %c0_106] : memref<72x512xbf16, #tpu.memory_space<vmem>>, vector<8x256xbf16>
    tpu.vector_store %arg11[%c0_105, %c0_106], %136 {strides = array<i32>} : memref<72x512xbf16, #tpu.memory_space<vmem>>, vector<8x256xbf16>,
    %c0_107 = arith.constant 0 : index
    %c478 = arith.constant 478 : index
    %138 = vector.load %arg10[%c0_107, %c478] : memref<8x896xf32, #tpu.memory_space<vmem>>, vector<8x256xf32>
    %139 = vector.broadcast %5 : vector<1x256xf32> to vector<8x256xf32>
    %140 = arith.mulf %138, %139 : vector<8x256xf32>
    %141 = arith.truncf %140 : vector<8x256xf32> to vector<8x256xbf16>
    %c0_108 = arith.constant 0 : index
    %c256_109 = arith.constant 256 : index
    %142 = vector.load %arg11[%c0_108, %c256_109] : memref<72x512xbf16, #tpu.memory_space<vmem>>, vector<8x256xbf16>
    tpu.vector_store %arg11[%c0_108, %c256_109], %141 {strides = array<i32>} : memref<72x512xbf16, #tpu.memory_space<vmem>>, vector<8x256xbf16>,
    %c0_110 = arith.constant 0 : index
    %c96 = arith.constant 96 : index
    %143 = vector.load %arg10[%c0_110, %c96] : memref<8x896xf32, #tpu.memory_space<vmem>>, vector<8x256xf32>
    %144 = arith.truncf %143 : vector<8x256xf32> to vector<8x256xbf16>
    %c8_111 = arith.constant 8 : index
    %c0_112 = arith.constant 0 : index
    %145 = vector.load %arg11[%c8_111, %c0_112] : memref<72x512xbf16, #tpu.memory_space<vmem>>, vector<8x256xbf16>
    tpu.vector_store %arg11[%c8_111, %c0_112], %144 {strides = array<i32>} : memref<72x512xbf16, #tpu.memory_space<vmem>>, vector<8x256xbf16>,
    %c0_113 = arith.constant 0 : index
    %c480 = arith.constant 480 : index
    %146 = vector.load %arg10[%c0_113, %c480] : memref<8x896xf32, #tpu.memory_space<vmem>>, vector<8x256xf32>
    %147 = arith.truncf %146 : vector<8x256xf32> to vector<8x256xbf16>
    %c8_114 = arith.constant 8 : index
    %c256_115 = arith.constant 256 : index
    %148 = vector.load %arg11[%c8_114, %c256_115] : memref<72x512xbf16, #tpu.memory_space<vmem>>, vector<8x256xbf16>
    tpu.vector_store %arg11[%c8_114, %c256_115], %147 {strides = array<i32>} : memref<72x512xbf16, #tpu.memory_space<vmem>>, vector<8x256xbf16>,
    %c0_116 = arith.constant 0 : index
    %c98 = arith.constant 98 : index
    %149 = vector.load %arg10[%c0_116, %c98] : memref<8x896xf32, #tpu.memory_space<vmem>>, vector<8x256xf32>
    %150 = vector.broadcast %8 : vector<1x256xf32> to vector<8x256xf32>
    %151 = arith.mulf %149, %150 : vector<8x256xf32>
    %152 = arith.truncf %151 : vector<8x256xf32> to vector<8x256xbf16>
    %c16_117 = arith.constant 16 : index
    %c0_118 = arith.constant 0 : index
    %153 = vector.load %arg11[%c16_117, %c0_118] : memref<72x512xbf16, #tpu.memory_space<vmem>>, vector<8x256xbf16>
    tpu.vector_store %arg11[%c16_117, %c0_118], %152 {strides = array<i32>} : memref<72x512xbf16, #tpu.memory_space<vmem>>, vector<8x256xbf16>,
    %c0_119 = arith.constant 0 : index
    %c482 = arith.constant 482 : index
    %154 = vector.load %arg10[%c0_119, %c482] : memref<8x896xf32, #tpu.memory_space<vmem>>, vector<8x256xf32>
    %155 = vector.broadcast %8 : vector<1x256xf32> to vector<8x256xf32>
    %156 = arith.mulf %154, %155 : vector<8x256xf32>
    %157 = arith.truncf %156 : vector<8x256xf32> to vector<8x256xbf16>
    %c16_120 = arith.constant 16 : index
    %c256_121 = arith.constant 256 : index
    %158 = vector.load %arg11[%c16_120, %c256_121] : memref<72x512xbf16, #tpu.memory_space<vmem>>, vector<8x256xbf16>
    tpu.vector_store %arg11[%c16_120, %c256_121], %157 {strides = array<i32>} : memref<72x512xbf16, #tpu.memory_space<vmem>>, vector<8x256xbf16>,
    %c0_122 = arith.constant 0 : index
    %c126 = arith.constant 126 : index
    %159 = vector.load %arg10[%c0_122, %c126] : memref<8x896xf32, #tpu.memory_space<vmem>>, vector<8x256xf32>
    %160 = vector.broadcast %5 : vector<1x256xf32> to vector<8x256xf32>
    %161 = arith.mulf %159, %160 : vector<8x256xf32>
    %162 = arith.truncf %161 : vector<8x256xf32> to vector<8x256xbf16>
    %c24_123 = arith.constant 24 : index
    %c0_124 = arith.constant 0 : index
    %163 = vector.load %arg11[%c24_123, %c0_124] : memref<72x512xbf16, #tpu.memory_space<vmem>>, vector<8x256xbf16>
    tpu.vector_store %arg11[%c24_123, %c0_124], %162 {strides = array<i32>} : memref<72x512xbf16, #tpu.memory_space<vmem>>, vector<8x256xbf16>,
    %c0_125 = arith.constant 0 : index
    %c510 = arith.constant 510 : index
    %164 = vector.load %arg10[%c0_125, %c510] : memref<8x896xf32, #tpu.memory_space<vmem>>, vector<8x256xf32>
    %165 = vector.broadcast %5 : vector<1x256xf32> to vector<8x256xf32>
    %166 = arith.mulf %164, %165 : vector<8x256xf32>
    %167 = arith.truncf %166 : vector<8x256xf32> to vector<8x256xbf16>
    %c24_126 = arith.constant 24 : index
    %c256_127 = arith.constant 256 : index
    %168 = vector.load %arg11[%c24_126, %c256_127] : memref<72x512xbf16, #tpu.memory_space<vmem>>, vector<8x256xbf16>
    tpu.vector_store %arg11[%c24_126, %c256_127], %167 {strides = array<i32>} : memref<72x512xbf16, #tpu.memory_space<vmem>>, vector<8x256xbf16>,
    %c0_128 = arith.constant 0 : index
    %c128_129 = arith.constant 128 : index
    %169 = vector.load %arg10[%c0_128, %c128_129] : memref<8x896xf32, #tpu.memory_space<vmem>>, vector<8x256xf32>
    %170 = arith.truncf %169 : vector<8x256xf32> to vector<8x256xbf16>
    %c32_130 = arith.constant 32 : index
    %c0_131 = arith.constant 0 : index
    %171 = vector.load %arg11[%c32_130, %c0_131] : memref<72x512xbf16, #tpu.memory_space<vmem>>, vector<8x256xbf16>
    tpu.vector_store %arg11[%c32_130, %c0_131], %170 {strides = array<i32>} : memref<72x512xbf16, #tpu.memory_space<vmem>>, vector<8x256xbf16>,
    %c0_132 = arith.constant 0 : index
    %c512_133 = arith.constant 512 : index
    %172 = vector.load %arg10[%c0_132, %c512_133] : memref<8x896xf32, #tpu.memory_space<vmem>>, vector<8x256xf32>
    %173 = arith.truncf %172 : vector<8x256xf32> to vector<8x256xbf16>
    %c32_134 = arith.constant 32 : index
    %c256_135 = arith.constant 256 : index
    %174 = vector.load %arg11[%c32_134, %c256_135] : memref<72x512xbf16, #tpu.memory_space<vmem>>, vector<8x256xbf16>
    tpu.vector_store %arg11[%c32_134, %c256_135], %173 {strides = array<i32>} : memref<72x512xbf16, #tpu.memory_space<vmem>>, vector<8x256xbf16>,
    %c0_136 = arith.constant 0 : index
    %c130 = arith.constant 130 : index
    %175 = vector.load %arg10[%c0_136, %c130] : memref<8x896xf32, #tpu.memory_space<vmem>>, vector<8x256xf32>
    %176 = vector.broadcast %8 : vector<1x256xf32> to vector<8x256xf32>
    %177 = arith.mulf %175, %176 : vector<8x256xf32>
    %178 = arith.truncf %177 : vector<8x256xf32> to vector<8x256xbf16>
    %c40_137 = arith.constant 40 : index
    %c0_138 = arith.constant 0 : index
    %179 = vector.load %arg11[%c40_137, %c0_138] : memref<72x512xbf16, #tpu.memory_space<vmem>>, vector<8x256xbf16>
    tpu.vector_store %arg11[%c40_137, %c0_138], %178 {strides = array<i32>} : memref<72x512xbf16, #tpu.memory_space<vmem>>, vector<8x256xbf16>,
    %c0_139 = arith.constant 0 : index
    %c514 = arith.constant 514 : index
    %180 = vector.load %arg10[%c0_139, %c514] : memref<8x896xf32, #tpu.memory_space<vmem>>, vector<8x256xf32>
    %181 = vector.broadcast %8 : vector<1x256xf32> to vector<8x256xf32>
    %182 = arith.mulf %180, %181 : vector<8x256xf32>
    %183 = arith.truncf %182 : vector<8x256xf32> to vector<8x256xbf16>
    %c40_140 = arith.constant 40 : index
    %c256_141 = arith.constant 256 : index
    %184 = vector.load %arg11[%c40_140, %c256_141] : memref<72x512xbf16, #tpu.memory_space<vmem>>, vector<8x256xbf16>
    tpu.vector_store %arg11[%c40_140, %c256_141], %183 {strides = array<i32>} : memref<72x512xbf16, #tpu.memory_space<vmem>>, vector<8x256xbf16>,
    %c0_142 = arith.constant 0 : index
    %c158 = arith.constant 158 : index
    %185 = vector.load %arg10[%c0_142, %c158] : memref<8x896xf32, #tpu.memory_space<vmem>>, vector<8x256xf32>
    %186 = vector.broadcast %5 : vector<1x256xf32> to vector<8x256xf32>
    %187 = arith.mulf %185, %186 : vector<8x256xf32>
    %188 = arith.truncf %187 : vector<8x256xf32> to vector<8x256xbf16>
    %c48_143 = arith.constant 48 : index
    %c0_144 = arith.constant 0 : index
    %189 = vector.load %arg11[%c48_143, %c0_144] : memref<72x512xbf16, #tpu.memory_space<vmem>>, vector<8x256xbf16>
    tpu.vector_store %arg11[%c48_143, %c0_144], %188 {strides = array<i32>} : memref<72x512xbf16, #tpu.memory_space<vmem>>, vector<8x256xbf16>,
    %c0_145 = arith.constant 0 : index
    %c542 = arith.constant 542 : index
    %190 = vector.load %arg10[%c0_145, %c542] : memref<8x896xf32, #tpu.memory_space<vmem>>, vector<8x256xf32>
    %191 = vector.broadcast %5 : vector<1x256xf32> to vector<8x256xf32>
    %192 = arith.mulf %190, %191 : vector<8x256xf32>
    %193 = arith.truncf %192 : vector<8x256xf32> to vector<8x256xbf16>
    %c48_146 = arith.constant 48 : index
    %c256_147 = arith.constant 256 : index
    %194 = vector.load %arg11[%c48_146, %c256_147] : memref<72x512xbf16, #tpu.memory_space<vmem>>, vector<8x256xbf16>
    tpu.vector_store %arg11[%c48_146, %c256_147], %193 {strides = array<i32>} : memref<72x512xbf16, #tpu.memory_space<vmem>>, vector<8x256xbf16>,
    %c0_148 = arith.constant 0 : index
    %c160 = arith.constant 160 : index
    %195 = vector.load %arg10[%c0_148, %c160] : memref<8x896xf32, #tpu.memory_space<vmem>>, vector<8x256xf32>
    %196 = arith.truncf %195 : vector<8x256xf32> to vector<8x256xbf16>
    %c56_149 = arith.constant 56 : index
    %c0_150 = arith.constant 0 : index
    %197 = vector.load %arg11[%c56_149, %c0_150] : memref<72x512xbf16, #tpu.memory_space<vmem>>, vector<8x256xbf16>
    tpu.vector_store %arg11[%c56_149, %c0_150], %196 {strides = array<i32>} : memref<72x512xbf16, #tpu.memory_space<vmem>>, vector<8x256xbf16>,
    %c0_151 = arith.constant 0 : index
    %c544 = arith.constant 544 : index
    %198 = vector.load %arg10[%c0_151, %c544] : memref<8x896xf32, #tpu.memory_space<vmem>>, vector<8x256xf32>
    %199 = arith.truncf %198 : vector<8x256xf32> to vector<8x256xbf16>
    %c56_152 = arith.constant 56 : index
    %c256_153 = arith.constant 256 : index
    %200 = vector.load %arg11[%c56_152, %c256_153] : memref<72x512xbf16, #tpu.memory_space<vmem>>, vector<8x256xbf16>
    tpu.vector_store %arg11[%c56_152, %c256_153], %199 {strides = array<i32>} : memref<72x512xbf16, #tpu.memory_space<vmem>>, vector<8x256xbf16>,
    %c0_154 = arith.constant 0 : index
    %c162 = arith.constant 162 : index
    %201 = vector.load %arg10[%c0_154, %c162] : memref<8x896xf32, #tpu.memory_space<vmem>>, vector<8x256xf32>
    %202 = vector.broadcast %8 : vector<1x256xf32> to vector<8x256xf32>
    %203 = arith.mulf %201, %202 : vector<8x256xf32>
    %204 = arith.truncf %203 : vector<8x256xf32> to vector<8x256xbf16>
    %c64_155 = arith.constant 64 : index
    %c0_156 = arith.constant 0 : index
    %205 = vector.load %arg11[%c64_155, %c0_156] : memref<72x512xbf16, #tpu.memory_space<vmem>>, vector<8x256xbf16>
    tpu.vector_store %arg11[%c64_155, %c0_156], %204 {strides = array<i32>} : memref<72x512xbf16, #tpu.memory_space<vmem>>, vector<8x256xbf16>,
    %c0_157 = arith.constant 0 : index
    %c546 = arith.constant 546 : index
    %206 = vector.load %arg10[%c0_157, %c546] : memref<8x896xf32, #tpu.memory_space<vmem>>, vector<8x256xf32>
    %207 = vector.broadcast %8 : vector<1x256xf32> to vector<8x256xf32>
    %208 = arith.mulf %206, %207 : vector<8x256xf32>
    %209 = arith.truncf %208 : vector<8x256xf32> to vector<8x256xbf16>
    %c64_158 = arith.constant 64 : index
    %c256_159 = arith.constant 256 : index
    %210 = vector.load %arg11[%c64_158, %c256_159] : memref<72x512xbf16, #tpu.memory_space<vmem>>, vector<8x256xbf16>
    tpu.vector_store %arg11[%c64_158, %c256_159], %209 {strides = array<i32>} : memref<72x512xbf16, #tpu.memory_space<vmem>>, vector<8x256xbf16>,
    %c1_160 = arith.constant 1 : index
    %c0_161 = arith.constant 0 : index
    %c0_162 = arith.constant 0 : index
    %211 = vector.load %arg5[%c1_160, %c0_161, %c0_162] : memref<3x8x72xbf16, #tpu.memory_space<vmem>>, vector<1x8x72xbf16>
    %212 = vector.shape_cast %211 : vector<1x8x72xbf16> to vector<8x72xbf16>
    %c0_163 = arith.constant 0 : index
    %c0_164 = arith.constant 0 : index
    %213 = vector.load %arg11[%c0_163, %c0_164] : memref<72x512xbf16, #tpu.memory_space<vmem>>, vector<72x512xbf16>
    %cst_165 = arith.constant dense<0.000000e+00> : vector<8x512xf32>
    %214 = tpu.matmul %212, %213, %cst_165 {dimension_numbers = #tpu.dot_dimension_numbers<[1], [0], [0], [1], [0, 0, 1, 1], [], []>} : vector<8x72xbf16>, vector<72x512xbf16>, vector<8x512xf32> -> vector<8x512xf32>
    %c2_166 = arith.constant 2 : index
    %c0_167 = arith.constant 0 : index
    %c0_168 = arith.constant 0 : index
    %215 = vector.load %arg7[%c2_166, %c0_167, %c0_168] : memref<5x8x1xf32, #tpu.memory_space<vmem>>, vector<1x8x1xf32>
    %216 = vector.shape_cast %215 : vector<1x8x1xf32> to vector<8x1xf32>
    %217 = vector.broadcast %216 : vector<8x1xf32> to vector<8x512xf32>
    %218 = arith.addf %214, %217 : vector<8x512xf32>
    %219 = arith.truncf %218 : vector<8x512xf32> to vector<8x512xbf16>
    %c8_169 = arith.constant 8 : index
    %c0_170 = arith.constant 0 : index
    %220 = vector.load %arg12[%c8_169, %c0_170] : memref<24x512xbf16, #tpu.memory_space<vmem>>, vector<8x512xbf16>
    tpu.vector_store %arg12[%c8_169, %c0_170], %219 {strides = array<i32>} : memref<24x512xbf16, #tpu.memory_space<vmem>>, vector<8x512xbf16>,
    %221 = vector.extract_strided_slice %218 {offsets = [0, 0], sizes = [8, 256], strides = [1, 1]} : vector<8x512xf32> to vector<8x256xf32>
    %c0_171 = arith.constant 0 : index
    %c128_172 = arith.constant 128 : index
    %222 = vector.load %arg10[%c0_171, %c128_172] : memref<8x896xf32, #tpu.memory_space<vmem>>, vector<8x256xf32>
    tpu.vector_store %arg10[%c0_171, %c128_172], %221 {strides = array<i32>} : memref<8x896xf32, #tpu.memory_space<vmem>>, vector<8x256xf32>,
    %223 = vector.extract_strided_slice %218 {offsets = [0, 256], sizes = [8, 256], strides = [1, 1]} : vector<8x512xf32> to vector<8x256xf32>
    %c0_173 = arith.constant 0 : index
    %c512_174 = arith.constant 512 : index
    %224 = vector.load %arg10[%c0_173, %c512_174] : memref<8x896xf32, #tpu.memory_space<vmem>>, vector<8x256xf32>
    tpu.vector_store %arg10[%c0_173, %c512_174], %223 {strides = array<i32>} : memref<8x896xf32, #tpu.memory_space<vmem>>, vector<8x256xf32>,
    %c0_175 = arith.constant 0 : index
    %c77 = arith.constant 77 : index
    %225 = vector.load %arg10[%c0_175, %c77] : memref<8x896xf32, #tpu.memory_space<vmem>>, vector<8x256xf32>
    %226 = vector.broadcast %4 : vector<1x256xf32> to vector<8x256xf32>
    %227 = arith.mulf %225, %226 : vector<8x256xf32>
    %228 = arith.truncf %227 : vector<8x256xf32> to vector<8x256xbf16>
    %c0_176 = arith.constant 0 : index
    %c0_177 = arith.constant 0 : index
    %229 = vector.load %arg11[%c0_176, %c0_177] : memref<72x512xbf16, #tpu.memory_space<vmem>>, vector<8x256xbf16>
    tpu.vector_store %arg11[%c0_176, %c0_177], %228 {strides = array<i32>} : memref<72x512xbf16, #tpu.memory_space<vmem>>, vector<8x256xbf16>,
    %c0_178 = arith.constant 0 : index
    %c461 = arith.constant 461 : index
    %230 = vector.load %arg10[%c0_178, %c461] : memref<8x896xf32, #tpu.memory_space<vmem>>, vector<8x256xf32>
    %231 = vector.broadcast %4 : vector<1x256xf32> to vector<8x256xf32>
    %232 = arith.mulf %230, %231 : vector<8x256xf32>
    %233 = arith.truncf %232 : vector<8x256xf32> to vector<8x256xbf16>
    %c0_179 = arith.constant 0 : index
    %c256_180 = arith.constant 256 : index
    %234 = vector.load %arg11[%c0_179, %c256_180] : memref<72x512xbf16, #tpu.memory_space<vmem>>, vector<8x256xbf16>
    tpu.vector_store %arg11[%c0_179, %c256_180], %233 {strides = array<i32>} : memref<72x512xbf16, #tpu.memory_space<vmem>>, vector<8x256xbf16>,
    %c0_181 = arith.constant 0 : index
    %c80 = arith.constant 80 : index
    %235 = vector.load %arg10[%c0_181, %c80] : memref<8x896xf32, #tpu.memory_space<vmem>>, vector<8x256xf32>
    %236 = arith.truncf %235 : vector<8x256xf32> to vector<8x256xbf16>
    %c8_182 = arith.constant 8 : index
    %c0_183 = arith.constant 0 : index
    %237 = vector.load %arg11[%c8_182, %c0_183] : memref<72x512xbf16, #tpu.memory_space<vmem>>, vector<8x256xbf16>
    tpu.vector_store %arg11[%c8_182, %c0_183], %236 {strides = array<i32>} : memref<72x512xbf16, #tpu.memory_space<vmem>>, vector<8x256xbf16>,
    %c0_184 = arith.constant 0 : index
    %c464 = arith.constant 464 : index
    %238 = vector.load %arg10[%c0_184, %c464] : memref<8x896xf32, #tpu.memory_space<vmem>>, vector<8x256xf32>
    %239 = arith.truncf %238 : vector<8x256xf32> to vector<8x256xbf16>
    %c8_185 = arith.constant 8 : index
    %c256_186 = arith.constant 256 : index
    %240 = vector.load %arg11[%c8_185, %c256_186] : memref<72x512xbf16, #tpu.memory_space<vmem>>, vector<8x256xbf16>
    tpu.vector_store %arg11[%c8_185, %c256_186], %239 {strides = array<i32>} : memref<72x512xbf16, #tpu.memory_space<vmem>>, vector<8x256xbf16>,
    %c0_187 = arith.constant 0 : index
    %c83 = arith.constant 83 : index
    %241 = vector.load %arg10[%c0_187, %c83] : memref<8x896xf32, #tpu.memory_space<vmem>>, vector<8x256xf32>
    %242 = vector.broadcast %9 : vector<1x256xf32> to vector<8x256xf32>
    %243 = arith.mulf %241, %242 : vector<8x256xf32>
    %244 = arith.truncf %243 : vector<8x256xf32> to vector<8x256xbf16>
    %c16_188 = arith.constant 16 : index
    %c0_189 = arith.constant 0 : index
    %245 = vector.load %arg11[%c16_188, %c0_189] : memref<72x512xbf16, #tpu.memory_space<vmem>>, vector<8x256xbf16>
    tpu.vector_store %arg11[%c16_188, %c0_189], %244 {strides = array<i32>} : memref<72x512xbf16, #tpu.memory_space<vmem>>, vector<8x256xbf16>,
    %c0_190 = arith.constant 0 : index
    %c467 = arith.constant 467 : index
    %246 = vector.load %arg10[%c0_190, %c467] : memref<8x896xf32, #tpu.memory_space<vmem>>, vector<8x256xf32>
    %247 = vector.broadcast %9 : vector<1x256xf32> to vector<8x256xf32>
    %248 = arith.mulf %246, %247 : vector<8x256xf32>
    %249 = arith.truncf %248 : vector<8x256xf32> to vector<8x256xbf16>
    %c16_191 = arith.constant 16 : index
    %c256_192 = arith.constant 256 : index
    %250 = vector.load %arg11[%c16_191, %c256_192] : memref<72x512xbf16, #tpu.memory_space<vmem>>, vector<8x256xbf16>
    tpu.vector_store %arg11[%c16_191, %c256_192], %249 {strides = array<i32>} : memref<72x512xbf16, #tpu.memory_space<vmem>>, vector<8x256xbf16>,
    %c0_193 = arith.constant 0 : index
    %c125 = arith.constant 125 : index
    %251 = vector.load %arg10[%c0_193, %c125] : memref<8x896xf32, #tpu.memory_space<vmem>>, vector<8x256xf32>
    %252 = vector.broadcast %4 : vector<1x256xf32> to vector<8x256xf32>
    %253 = arith.mulf %251, %252 : vector<8x256xf32>
    %254 = arith.truncf %253 : vector<8x256xf32> to vector<8x256xbf16>
    %c24_194 = arith.constant 24 : index
    %c0_195 = arith.constant 0 : index
    %255 = vector.load %arg11[%c24_194, %c0_195] : memref<72x512xbf16, #tpu.memory_space<vmem>>, vector<8x256xbf16>
    tpu.vector_store %arg11[%c24_194, %c0_195], %254 {strides = array<i32>} : memref<72x512xbf16, #tpu.memory_space<vmem>>, vector<8x256xbf16>,
    %c0_196 = arith.constant 0 : index
    %c509 = arith.constant 509 : index
    %256 = vector.load %arg10[%c0_196, %c509] : memref<8x896xf32, #tpu.memory_space<vmem>>, vector<8x256xf32>
    %257 = vector.broadcast %4 : vector<1x256xf32> to vector<8x256xf32>
    %258 = arith.mulf %256, %257 : vector<8x256xf32>
    %259 = arith.truncf %258 : vector<8x256xf32> to vector<8x256xbf16>
    %c24_197 = arith.constant 24 : index
    %c256_198 = arith.constant 256 : index
    %260 = vector.load %arg11[%c24_197, %c256_198] : memref<72x512xbf16, #tpu.memory_space<vmem>>, vector<8x256xbf16>
    tpu.vector_store %arg11[%c24_197, %c256_198], %259 {strides = array<i32>} : memref<72x512xbf16, #tpu.memory_space<vmem>>, vector<8x256xbf16>,
    %c0_199 = arith.constant 0 : index
    %c128_200 = arith.constant 128 : index
    %261 = vector.load %arg10[%c0_199, %c128_200] : memref<8x896xf32, #tpu.memory_space<vmem>>, vector<8x256xf32>
    %262 = arith.truncf %261 : vector<8x256xf32> to vector<8x256xbf16>
    %c32_201 = arith.constant 32 : index
    %c0_202 = arith.constant 0 : index
    %263 = vector.load %arg11[%c32_201, %c0_202] : memref<72x512xbf16, #tpu.memory_space<vmem>>, vector<8x256xbf16>
    tpu.vector_store %arg11[%c32_201, %c0_202], %262 {strides = array<i32>} : memref<72x512xbf16, #tpu.memory_space<vmem>>, vector<8x256xbf16>,
    %c0_203 = arith.constant 0 : index
    %c512_204 = arith.constant 512 : index
    %264 = vector.load %arg10[%c0_203, %c512_204] : memref<8x896xf32, #tpu.memory_space<vmem>>, vector<8x256xf32>
    %265 = arith.truncf %264 : vector<8x256xf32> to vector<8x256xbf16>
    %c32_205 = arith.constant 32 : index
    %c256_206 = arith.constant 256 : index
    %266 = vector.load %arg11[%c32_205, %c256_206] : memref<72x512xbf16, #tpu.memory_space<vmem>>, vector<8x256xbf16>
    tpu.vector_store %arg11[%c32_205, %c256_206], %265 {strides = array<i32>} : memref<72x512xbf16, #tpu.memory_space<vmem>>, vector<8x256xbf16>,
    %c0_207 = arith.constant 0 : index
    %c131 = arith.constant 131 : index
    %267 = vector.load %arg10[%c0_207, %c131] : memref<8x896xf32, #tpu.memory_space<vmem>>, vector<8x256xf32>
    %268 = vector.broadcast %9 : vector<1x256xf32> to vector<8x256xf32>
    %269 = arith.mulf %267, %268 : vector<8x256xf32>
    %270 = arith.truncf %269 : vector<8x256xf32> to vector<8x256xbf16>
    %c40_208 = arith.constant 40 : index
    %c0_209 = arith.constant 0 : index
    %271 = vector.load %arg11[%c40_208, %c0_209] : memref<72x512xbf16, #tpu.memory_space<vmem>>, vector<8x256xbf16>
    tpu.vector_store %arg11[%c40_208, %c0_209], %270 {strides = array<i32>} : memref<72x512xbf16, #tpu.memory_space<vmem>>, vector<8x256xbf16>,
    %c0_210 = arith.constant 0 : index
    %c515 = arith.constant 515 : index
    %272 = vector.load %arg10[%c0_210, %c515] : memref<8x896xf32, #tpu.memory_space<vmem>>, vector<8x256xf32>
    %273 = vector.broadcast %9 : vector<1x256xf32> to vector<8x256xf32>
    %274 = arith.mulf %272, %273 : vector<8x256xf32>
    %275 = arith.truncf %274 : vector<8x256xf32> to vector<8x256xbf16>
    %c40_211 = arith.constant 40 : index
    %c256_212 = arith.constant 256 : index
    %276 = vector.load %arg11[%c40_211, %c256_212] : memref<72x512xbf16, #tpu.memory_space<vmem>>, vector<8x256xbf16>
    tpu.vector_store %arg11[%c40_211, %c256_212], %275 {strides = array<i32>} : memref<72x512xbf16, #tpu.memory_space<vmem>>, vector<8x256xbf16>,
    %c0_213 = arith.constant 0 : index
    %c173 = arith.constant 173 : index
    %277 = vector.load %arg10[%c0_213, %c173] : memref<8x896xf32, #tpu.memory_space<vmem>>, vector<8x256xf32>
    %278 = vector.broadcast %4 : vector<1x256xf32> to vector<8x256xf32>
    %279 = arith.mulf %277, %278 : vector<8x256xf32>
    %280 = arith.truncf %279 : vector<8x256xf32> to vector<8x256xbf16>
    %c48_214 = arith.constant 48 : index
    %c0_215 = arith.constant 0 : index
    %281 = vector.load %arg11[%c48_214, %c0_215] : memref<72x512xbf16, #tpu.memory_space<vmem>>, vector<8x256xbf16>
    tpu.vector_store %arg11[%c48_214, %c0_215], %280 {strides = array<i32>} : memref<72x512xbf16, #tpu.memory_space<vmem>>, vector<8x256xbf16>,
    %c0_216 = arith.constant 0 : index
    %c557 = arith.constant 557 : index
    %282 = vector.load %arg10[%c0_216, %c557] : memref<8x896xf32, #tpu.memory_space<vmem>>, vector<8x256xf32>
    %283 = vector.broadcast %4 : vector<1x256xf32> to vector<8x256xf32>
    %284 = arith.mulf %282, %283 : vector<8x256xf32>
    %285 = arith.truncf %284 : vector<8x256xf32> to vector<8x256xbf16>
    %c48_217 = arith.constant 48 : index
    %c256_218 = arith.constant 256 : index
    %286 = vector.load %arg11[%c48_217, %c256_218] : memref<72x512xbf16, #tpu.memory_space<vmem>>, vector<8x256xbf16>
    tpu.vector_store %arg11[%c48_217, %c256_218], %285 {strides = array<i32>} : memref<72x512xbf16, #tpu.memory_space<vmem>>, vector<8x256xbf16>,
    %c0_219 = arith.constant 0 : index
    %c176 = arith.constant 176 : index
    %287 = vector.load %arg10[%c0_219, %c176] : memref<8x896xf32, #tpu.memory_space<vmem>>, vector<8x256xf32>
    %288 = arith.truncf %287 : vector<8x256xf32> to vector<8x256xbf16>
    %c56_220 = arith.constant 56 : index
    %c0_221 = arith.constant 0 : index
    %289 = vector.load %arg11[%c56_220, %c0_221] : memref<72x512xbf16, #tpu.memory_space<vmem>>, vector<8x256xbf16>
    tpu.vector_store %arg11[%c56_220, %c0_221], %288 {strides = array<i32>} : memref<72x512xbf16, #tpu.memory_space<vmem>>, vector<8x256xbf16>,
    %c0_222 = arith.constant 0 : index
    %c560 = arith.constant 560 : index
    %290 = vector.load %arg10[%c0_222, %c560] : memref<8x896xf32, #tpu.memory_space<vmem>>, vector<8x256xf32>
    %291 = arith.truncf %290 : vector<8x256xf32> to vector<8x256xbf16>
    %c56_223 = arith.constant 56 : index
    %c256_224 = arith.constant 256 : index
    %292 = vector.load %arg11[%c56_223, %c256_224] : memref<72x512xbf16, #tpu.memory_space<vmem>>, vector<8x256xbf16>
    tpu.vector_store %arg11[%c56_223, %c256_224], %291 {strides = array<i32>} : memref<72x512xbf16, #tpu.memory_space<vmem>>, vector<8x256xbf16>,
    %c0_225 = arith.constant 0 : index
    %c179 = arith.constant 179 : index
    %293 = vector.load %arg10[%c0_225, %c179] : memref<8x896xf32, #tpu.memory_space<vmem>>, vector<8x256xf32>
    %294 = vector.broadcast %9 : vector<1x256xf32> to vector<8x256xf32>
    %295 = arith.mulf %293, %294 : vector<8x256xf32>
    %296 = arith.truncf %295 : vector<8x256xf32> to vector<8x256xbf16>
    %c64_226 = arith.constant 64 : index
    %c0_227 = arith.constant 0 : index
    %297 = vector.load %arg11[%c64_226, %c0_227] : memref<72x512xbf16, #tpu.memory_space<vmem>>, vector<8x256xbf16>
    tpu.vector_store %arg11[%c64_226, %c0_227], %296 {strides = array<i32>} : memref<72x512xbf16, #tpu.memory_space<vmem>>, vector<8x256xbf16>,
    %c0_228 = arith.constant 0 : index
    %c563 = arith.constant 563 : index
    %298 = vector.load %arg10[%c0_228, %c563] : memref<8x896xf32, #tpu.memory_space<vmem>>, vector<8x256xf32>
    %299 = vector.broadcast %9 : vector<1x256xf32> to vector<8x256xf32>
    %300 = arith.mulf %298, %299 : vector<8x256xf32>
    %301 = arith.truncf %300 : vector<8x256xf32> to vector<8x256xbf16>
    %c64_229 = arith.constant 64 : index
    %c256_230 = arith.constant 256 : index
    %302 = vector.load %arg11[%c64_229, %c256_230] : memref<72x512xbf16, #tpu.memory_space<vmem>>, vector<8x256xbf16>
    tpu.vector_store %arg11[%c64_229, %c256_230], %301 {strides = array<i32>} : memref<72x512xbf16, #tpu.memory_space<vmem>>, vector<8x256xbf16>,
    %c2_231 = arith.constant 2 : index
    %c0_232 = arith.constant 0 : index
    %c0_233 = arith.constant 0 : index
    %303 = vector.load %arg5[%c2_231, %c0_232, %c0_233] : memref<3x8x72xbf16, #tpu.memory_space<vmem>>, vector<1x8x72xbf16>
    %304 = vector.shape_cast %303 : vector<1x8x72xbf16> to vector<8x72xbf16>
    %c0_234 = arith.constant 0 : index
    %c0_235 = arith.constant 0 : index
    %305 = vector.load %arg11[%c0_234, %c0_235] : memref<72x512xbf16, #tpu.memory_space<vmem>>, vector<72x512xbf16>
    %cst_236 = arith.constant dense<0.000000e+00> : vector<8x512xf32>
    %306 = tpu.matmul %304, %305, %cst_236 {dimension_numbers = #tpu.dot_dimension_numbers<[1], [0], [0], [1], [0, 0, 1, 1], [], []>} : vector<8x72xbf16>, vector<72x512xbf16>, vector<8x512xf32> -> vector<8x512xf32>
    %c3 = arith.constant 3 : index
    %c0_237 = arith.constant 0 : index
    %c0_238 = arith.constant 0 : index
    %307 = vector.load %arg7[%c3, %c0_237, %c0_238] : memref<5x8x1xf32, #tpu.memory_space<vmem>>, vector<1x8x1xf32>
    %308 = vector.shape_cast %307 : vector<1x8x1xf32> to vector<8x1xf32>
    %309 = vector.broadcast %308 : vector<8x1xf32> to vector<8x512xf32>
    %310 = arith.addf %306, %309 : vector<8x512xf32>
    %311 = arith.truncf %310 : vector<8x512xf32> to vector<8x512xbf16>
    %c16_239 = arith.constant 16 : index
    %c0_240 = arith.constant 0 : index
    %312 = vector.load %arg12[%c16_239, %c0_240] : memref<24x512xbf16, #tpu.memory_space<vmem>>, vector<8x512xbf16>
    tpu.vector_store %arg12[%c16_239, %c0_240], %311 {strides = array<i32>} : memref<24x512xbf16, #tpu.memory_space<vmem>>, vector<8x512xbf16>,
    %c0_241 = arith.constant 0 : index
    %c0_242 = arith.constant 0 : index
    %313 = vector.load %arg6[%c0_241, %c0_242] : memref<8x24xbf16, #tpu.memory_space<vmem>>, vector<8x24xbf16>
    %c0_243 = arith.constant 0 : index
    %c0_244 = arith.constant 0 : index
    %314 = vector.load %arg12[%c0_243, %c0_244] : memref<24x512xbf16, #tpu.memory_space<vmem>>, vector<24x512xbf16>
    %cst_245 = arith.constant dense<0.000000e+00> : vector<8x512xf32>
    %315 = tpu.matmul %313, %314, %cst_245 {dimension_numbers = #tpu.dot_dimension_numbers<[1], [0], [0], [1], [0, 0, 1, 1], [], []>} : vector<8x24xbf16>, vector<24x512xbf16>, vector<8x512xf32> -> vector<8x512xf32>
    %c4_246 = arith.constant 4 : index
    %c0_247 = arith.constant 0 : index
    %c0_248 = arith.constant 0 : index
    %316 = vector.load %arg7[%c4_246, %c0_247, %c0_248] : memref<5x8x1xf32, #tpu.memory_space<vmem>>, vector<1x8x1xf32>
    %317 = vector.shape_cast %316 : vector<1x8x1xf32> to vector<8x1xf32>
    %318 = vector.broadcast %317 : vector<8x1xf32> to vector<8x512xf32>
    %319 = arith.addf %315, %318 : vector<8x512xf32>
    %320 = arith.addf %319, %36 : vector<8x512xf32>
    %321 = vector.extract_strided_slice %320 {offsets = [0, 0], sizes = [8, 256], strides = [1, 1]} : vector<8x512xf32> to vector<8x256xf32>
    %c0_249 = arith.constant 0 : index
    %c0_250 = arith.constant 0 : index
    %c0_251 = arith.constant 0 : index
    %322 = vector.load %arg9[%c0_249, %c0_250, %c0_251] : memref<2x8x256xf32, #tpu.memory_space<vmem>>, vector<1x8x256xf32>
    %323 = vector.shape_cast %322 : vector<1x8x256xf32> to vector<8x256xf32>
    %324 = vector.shape_cast %321 : vector<8x256xf32> to vector<1x8x256xf32>
    tpu.vector_store %arg9[%c0_249, %c0_250, %c0_251], %324 {strides = array<i32>} : memref<2x8x256xf32, #tpu.memory_space<vmem>>, vector<1x8x256xf32>,
    %325 = vector.extract_strided_slice %320 {offsets = [0, 256], sizes = [8, 256], strides = [1, 1]} : vector<8x512xf32> to vector<8x256xf32>
    %c1_252 = arith.constant 1 : index
    %c0_253 = arith.constant 0 : index
    %c0_254 = arith.constant 0 : index
    %326 = vector.load %arg9[%c1_252, %c0_253, %c0_254] : memref<2x8x256xf32, #tpu.memory_space<vmem>>, vector<1x8x256xf32>
    %327 = vector.shape_cast %326 : vector<1x8x256xf32> to vector<8x256xf32>
    %328 = vector.shape_cast %325 : vector<8x256xf32> to vector<1x8x256xf32>
    tpu.vector_store %arg9[%c1_252, %c0_253, %c0_254], %328 {strides = array<i32>} : memref<2x8x256xf32, #tpu.memory_space<vmem>>, vector<1x8x256xf32>,
    return
  }
  func.func @transform_0(%arg0: i32) -> (i32, i32, i32) {
    %c0_i32 = arith.constant 0 : i32
    %c0_i32_0 = arith.constant 0 : i32
    %c0_i32_1 = arith.constant 0 : i32
    return %arg0, %c0_i32, %c0_i32_0 : i32, i32, i32
  }
  func.func @transform_1(%arg0: i32) -> (i32, i32, i32) {
    %c0_i32 = arith.constant 0 : i32
    %c0_i32_0 = arith.constant 0 : i32
    %c0_i32_1 = arith.constant 0 : i32
    return %arg0, %c0_i32, %c0_i32_0 : i32, i32, i32
  }
  func.func @transform_2(%arg0: i32) -> (i32, i32) {
    %c0_i32 = arith.constant 0 : i32
    %c0_i32_0 = arith.constant 0 : i32
    %c0_i32_1 = arith.constant 0 : i32
    return %c0_i32, %c0_i32_0 : i32, i32
  }
  func.func @transform_3(%arg0: i32) -> (i32, i32) {
    %c0_i32 = arith.constant 0 : i32
    %c0_i32_0 = arith.constant 0 : i32
    %c0_i32_1 = arith.constant 0 : i32
    return %c0_i32, %c0_i32_0 : i32, i32
  }
  func.func @transform_4(%arg0: i32) -> (i32, i32, i32) {
    %c0_i32 = arith.constant 0 : i32
    %c0_i32_0 = arith.constant 0 : i32
    %c0_i32_1 = arith.constant 0 : i32
    %c0_i32_2 = arith.constant 0 : i32
    return %c0_i32, %c0_i32_0, %c0_i32_1 : i32, i32, i32
  }
  func.func @transform_5(%arg0: i32) -> (i32, i32) {
    %c0_i32 = arith.constant 0 : i32
    %c0_i32_0 = arith.constant 0 : i32
    %c0_i32_1 = arith.constant 0 : i32
    return %c0_i32, %c0_i32_0 : i32, i32
  }
  func.func @transform_6(%arg0: i32) -> (i32, i32, i32) {
    %c0_i32 = arith.constant 0 : i32
    %c0_i32_0 = arith.constant 0 : i32
    %c0_i32_1 = arith.constant 0 : i32
    %c0_i32_2 = arith.constant 0 : i32
    return %c0_i32, %c0_i32_0, %c0_i32_1 : i32, i32, i32
  }
  func.func @transform_7(%arg0: i32) -> (i32, i32) {
    %c0_i32 = arith.constant 0 : i32
    %c0_i32_0 = arith.constant 0 : i32
    %c0_i32_1 = arith.constant 0 : i32
    return %c0_i32, %c0_i32_0 : i32, i32
  }
  func.func @transform_8(%arg0: i32) -> (i32, i32, i32) {
    %c0_i32 = arith.constant 0 : i32
    %c0_i32_0 = arith.constant 0 : i32
    %c0_i32_1 = arith.constant 0 : i32
    return %arg0, %c0_i32, %c0_i32_0 : i32, i32, i32
  }
}

</mosaic_0001>

<bundles_post_ra>
// kernel: upsample_dilated_residual_block.1
= control target key start
LH: loop header
LB: loop body
LE: loop exit
PB: predicated region body
PF: predicated region fallthrough
CT: control target
= control target key end

     0   :  { %s3689_s27 = smov 0   ;;  %s4476_s0 = inlined_call_operand.vmem [shape: bf16[4,4,64], index: 0, kind: input, shape index: {}]   ;;  %s4477_s1 = inlined_call_operand.vmem [shape: bf16[4,4,256], index: 1, kind: input, shape index: {}]   ;;  %s4478_s2 = inlined_call_operand.vmem [shape: bf16[64,256], index: 2, kind: input, shape index: {}]   ;;  %s4479_s3 = inlined_call_operand.vmem [shape: bf16[8,8], index: 3, kind: input, shape index: {}]   ;;  %s4480_s4 = inlined_call_operand.vmem [shape: bf16[3,8,72], index: 4, kind: input, shape index: {}]   ;;  %s4481_s5 = inlined_call_operand.vmem [shape: bf16[8,24], index: 5, kind: input, shape index: {}]   ;;  %s4482_s6 = inlined_call_operand.vmem [shape: f32[5,8,1], index: 6, kind: input, shape index: {}]   ;;  %s4483_s7 = inlined_call_operand.vmem [shape: f32[7,256], index: 7, kind: input, shape index: {}]   ;;  %s4484_s8 = inlined_call_operand.vmem [shape: f32[4,8,256], index: 8, kind: output, shape index: {}]  }
   0x1 LB: > { %s3186_s28 = sadd.s32 4294967295, %s3615_s27   ;;  %p3190_p0 = scmp.ge.s32.totalorder %s3615_s27, 1  ;;  %s3615_s27 = sphi %s3689_s27, %s18_s27  }
   0x2   : > { %p275_p1 = scmp.lt.s32.totalorder %s3615_s27, 3 }
   0x4   : > { %p276_p2 = pnand %p3190_p0, %p275_p1 }
   0x5   : > { %s3191_s9 = sshll.u32 (!%p276_p2), %s3186_s28, 1  ;;  %s3618_s14 = smov (!%p276_p2), 17  }
   0x6   : > { %279 = sbr.rel (%p276_p2) target bundleno = 1776 (0x6f0), region = 52  ;;  %p317_p3 = scmp.lt.s32.totalorder (!%p276_p2), %s3191_s9, 3 }
   0x7   : > { %s3619_s15 = smov (!%p276_p2), 15   ;;  %s3620_s16 = smov (!%p276_p2), 1  }
   0x8   : > { %s3621_s17 = smov (!%p276_p2), 113   ;;  %s3622_s18 = smov (!%p276_p2), 127  }
   0x9   : > { %s3623_s19 = smov (!%p276_p2), 111   ;;  %s3625_s20 = smov (!%p276_p2), 112  }
   0xa   : > { %s3628_s12 = smov (!%p276_p2), 34   ;;  %s3635_s23 = smov (!%p276_p2), 32  }
   0xb   : > { %v3597_v0 = vld [vmem:[%s4478_s2 + $0x34] ss:$8 sps:$4 sm:$0xff]   ;;  %v3599_v1 = vld [vmem:[%s4478_s2 + $0x30] ss:$8 sps:$4 sm:$0xff]   ;;  %v3617_v2 = vmov 0   ;;  %s4486_s9 = smov (!%p317_p3, %s3191_s9), 3  ;;  %v698_v12 = vlaneseq }
   0xc   : > { %436 = vmatprep.mubr.bf16.mxu0 %v3617_v2  ;;  %547 = vmatprep.mubr.bf16.mxu1 %v3617_v2  ;;  %v3600_v3 = vld [vmem:[%s4478_s2 + $0x24] ss:$8 sps:$4 sm:$0xff]   ;;  %v3602_v4 = vld [vmem:[%s4478_s2 + $0x20] ss:$8 sps:$4 sm:$0xff]   ;;  %v3603_v5 = vld [vmem:[%s4478_s2 + $0x14] ss:$8 sps:$4 sm:$0xff]  }
   0xd   : > { %412 = vmatprep.subr.bf16.mxu0 %v3597_v0  ;;  %523 = vmatprep.subr.bf16.mxu1 %v3597_v0  ;;  %v3605_v6 = vld [vmem:[%s4478_s2 + $0x10] ss:$8 sps:$4 sm:$0xff]   ;;  %v3606_v7 = vld [vmem:[%s4478_s2 + $0x4] ss:$8 sps:$4 sm:$0xff]   ;;  %s3192_s22 = sshll.u32 %s4486_s9, 1  ;;  %vm400_vm0 = vcmask 523264  }
   0xe   : > { %413 = vmatpush1.bf16.msra.mxu0 %v3599_v1  ;;  %524 = vmatpush1.bf16.msra.mxu1 %v3599_v1  ;;  %v3608_v8 = vld [vmem:[%s4478_s2] ss:$8 sps:$4 sm:$0xff]   ;;  %s320_s28 = scalar_lea.vmem %s4476_s0, %s3192_s22  ;;  %v699_v13 = vshrl.u32 %v698_v12, 7  ;;  %v3201_v14 = vld [vmem:[%s4483_s7 + $0x4] ss:$8 sm:$0x3] }
   0xf   : > { %414 = vmatprep.subr.bf16.mxu0 %v3600_v3  ;;  %525 = vmatprep.subr.bf16.mxu1 %v3600_v3  ;;  %v351_v9 = vld [vmem:[%s320_s28] sm:$0x3]  ;;  %v3214_v10 = vld [vmem:[%s320_s28 + $0x2] sm:$0x3]  ;;  %v3624_v22 = vmov 0.0|0.0   ;;  %s3436_s21 = sshll.u32 %s4486_s9, 2 }
  0x10   : > { %3595 = vset.pattern.permute.xlu0 %v3617_v2  ;;  %3596 = vset.pattern.permute.xlu1 %v3617_v2  ;;  %v576_v11 = vld [vmem:[%s4482_s6] sm:$0xff]  ;;  %v3739_v15 = vsub.s32 1, %v699_v13  ;;  %v3741_v16 = vsub.s32 0, %v699_v13  ;;  %s327_s24 = scalar_lea.vmem %s4477_s1, %s3436_s21  ;;  %vm450_vm1 = vcmask 1043456   ;;  %vm592_vm2 = vcmask 64512   ;;  %s3627_s28 = smov 16  }
  0x11   : > { %579 = vperm.xlu0 %3595, %v576_v11   ;;  %v3200_v17 = vld [vmem:[%s4483_s7 + $0x2] ss:$8 sm:$0x3]  ;;  %vm833_vm3 = vcmask 924672   ;;  %vm897_vm4 = vcmask 1039360   ;;  %vm710_vm5 = vcmask 908288  }
  0x12   : > { %415 = vmatpush1.bf16.msra.mxu0 %v3602_v4  ;;  %526 = vmatpush1.bf16.msra.mxu1 %v3602_v4  ;;  %v828_v18 = vrot.slane %v3201_v14, %v3739_v15  ;;  %v824_v19 = vrot.slane %v3201_v14, %v3741_v16  ;;  %v705_v20 = vrot.slane %v3200_v17, %v3739_v15  ;;  %v445_v23 = vld [vmem:[%s327_s24] sm:$0xff]   ;;  %vm737_vm6 = vcmask 138240   ;;  %s3634_s22 = smov 96   ;;  %s3636_s10 = smov 51  }
  0x13   : > { %416 = vmatprep.subr.bf16.mxu0 %v3603_v5  ;;  %527 = vmatprep.subr.bf16.mxu1 %v3603_v5  ;;  %v701_v21 = vrot.slane %v3200_v17, %v3741_v16  ;;  %v446_v24 = vunpack.c.l.bf16 %v445_v23  ;;  %v558_v25 = vunpack.c.h.bf16 %v445_v23  ;;  %v573_v48 = vld [vmem:[%s4479_s3] sm:$0xf]  ;;  %v3626_v5 = vmov 0.0   ;;  %s3637_s11 = smov 45   ;;  %s3639_s13 = smov 83  }
  0x14   : > { %1158 = vrot.lane.b32.xlu1 %v828_v18, %s3618_s14  ;;  %vm859_vm7 = vcmask 121856   ;;  %vm923_vm8 = vcmask 7168   ;;  %vm1125_vm9 = vcmask 916480   ;;  %vm789_vm10 = vcmask 130048   ;;  %s3437_s29 = sshll.u32 %s4486_s9, 4 }
  0x15   : > { %1156 = vrot.lane.b32.xlu0 %v824_v19, %s3618_s14  ;;  %v448_v26 = vcombine.low %v446_v24, %v446_v24  ;;  %v560_v27 = vcombine.low %v558_v25, %v558_v25  ;;  %vm1333_vm11 = vcmask 588800   ;;  %vm1591_vm12 = vcmask 801792  }
  0x16   : > { %417 = vmatpush1.bf16.msra.mxu0 %v3605_v6  ;;  %528 = vmatpush1.bf16.msra.mxu1 %v3605_v6  ;;  %vm1655_vm13 = vcmask 1031168   ;;  %vm1469_vm14 = vcmask 769024   ;;  %vm1495_vm15 = vcmask 277504  }
  0x17   : > { %418 = vmatprep.subr.bf16.mxu0 %v3606_v7  ;;  %529 = vmatprep.subr.bf16.mxu1 %v3606_v7 }
  0x18   : > { %1043 = vrot.lane.b32.xlu1 %v701_v21, %s3619_s15 }
  0x19   : > { %1045 = vrot.lane.b32.xlu0 %v705_v20, %s3619_s15 }
  0x1a   : > { %419 = vmatpush1.bf16.msra.mxu0 %v3608_v8  ;;  %530 = vmatpush1.bf16.msra.mxu1 %v3608_v8 }
  0x1c   : > { %979 = vrot.lane.b32.xlu1 %v824_v19, %s3620_s16 }
  0x1d   : > { %3212 = vmatmul.mubr.msk.bf16.vlgmr.msra.gmra.mxu0 %vm400_vm0, %v351_v9  ;;  %3223 = vmatmul.mubr.msk.bf16.vlgmr.msra.gmra.mxu1 %vm400_vm0, %v3214_v10  ;;  %vm1617_vm0 = vcmask 244736  }
  0x1e   : > { %640 = vmatprep.mubr.bf16.mxu0 %v3617_v2  ;;  %681 = vmatprep.mubr.bf16.mxu1 %v3617_v2 }
  0x1f   : > { %981 = vrot.lane.b32.xlu0 %v828_v18, %s3620_s16 }
  0x20   : > { %829 = vrot.lane.b32.xlu1 %v824_v19, %s3621_s17 }
  0x23   : > { %831 = vrot.lane.b32.xlu0 %v828_v18, %s3621_s17 }
  0x24   : > { %893 = vrot.lane.b32.xlu1 %v701_v21, %s3622_s18 }
  0x27   : > { %895 = vrot.lane.b32.xlu0 %v705_v20, %s3622_s18 }
  0x28   : > { %706 = vrot.lane.b32.xlu1 %v701_v21, %s3623_s19 }
  0x2b   : > { %708 = vrot.lane.b32.xlu0 %v705_v20, %s3623_s19 }
  0x2f   : > { %1120 = vrot.lane.b32.xlu0 %v3624_v22, %s3625_s20 }
  0x33   : > { %1145 = vrot.lane.b32.xlu0 %v3624_v22, %s3625_s20 }
  0x86   : > { %v3775_v43 = vpop.permute.xlu1 %1158 }
  0x87   : > { %v1167_v47 = vmul.f32 0.0, %v3775_v43 }
  0x89   : > { %v3471_v50 = vpack.c.bf16 %v1167_v47, %v1167_v47 }
  0x8a   : > { %v3800_v58 = vpop.permute.xlu1 %1043 }
  0x8b   : > { %1181 = vrot.lane.b32.xlu0 %v3471_v50, %s3623_s19 }
  0x8c   : > { %v580_v49 = vpop.permute.xlu0 %579 }
  0x8e   : > { %v3802_v59 = vpop.permute.xlu1 %979 }
  0x8f   : > { %1209 = vrot.lane.b32.xlu0 %v3471_v50, %s3623_s19 }
  0x90   : > { %v3784_v51 = vpop.permute.xlu0 %1156 }
  0x92   : > { %v830_v8 = vpop.permute.xlu1 %829 }
  0x93   : > { %v838_v23 = vmul.f32 0.0, %v830_v8 }
  0x94   : > { %v3789_v52 = vpop.permute.xlu0 %1045 }
  0x95   : > { %v1054_v53 = vmul.f32 0.0, %v3789_v52 }
  0x97   : > { %v3463_v54 = vpack.c.bf16 %v1054_v53, %v1054_v53  ;;  %v1161_v53 = vsel %vm737_vm6, %v3784_v51, %v3775_v43  ;;  %v1048_v43 = vsel %vm859_vm7, %v3800_v58, %v3789_v52 }
  0x98   : > { %v3793_v55 = vpop.permute.xlu0 %981 }
  0x99   : > { %v990_v56 = vmul.f32 0.0, %v3793_v55  ;;  %1068 = vrot.lane.b32.xlu0 %v3463_v54, %s3621_s17  ;;  %v984_v52 = vsel %vm923_vm8, %v3802_v59, %v3793_v55 }
  0x9b   : > { %v3459_v57 = vpack.c.bf16 %v990_v56, %v990_v56 }
  0x9c   : > { %v832_v62 = vpop.permute.xlu0 %831 }
  0x9d   : > { %1096 = vrot.lane.b32.xlu0 %v3463_v54, %s3621_s17  ;;  %v834_v18 = vsel %vm833_vm3, %v830_v8, %v832_v62 }
  0xa0   : > { %v896_v13 = vpop.permute.xlu0 %895 }
  0xa1   : > { %1004 = vrot.lane.b32.xlu0 %v3459_v57, %s3622_s18 }
  0xa5   : > { %1032 = vrot.lane.b32.xlu0 %v3459_v57, %s3622_s18 }
  0xdd   : > { %v438_v28 = vpop.f32.mrf.mxu0  ;;  %v549_v29 = vpop.f32.mrf.mxu1 }
  0xde   : > { %v451_v30 = vsel %vm450_vm1, %v438_v28, %v448_v26  ;;  %v562_v31 = vsel %vm450_vm1, %v549_v29, %v560_v27 }
  0xdf   : > { %v3548_v32 = vpack.c.bf16 %v451_v30, %v451_v30  ;;  %v3550_v33 = vpack.c.bf16 %v562_v31, %v562_v31  ;;  %v440_v34 = vpop.f32.mrf.mxu0  ;;  %v551_v35 = vpop.f32.mrf.mxu1 }
  0xe0   : > { %v452_v36 = vsel %vm450_vm1, %v440_v34, %v446_v24  ;;  %v563_v37 = vsel %vm450_vm1, %v551_v35, %v558_v25  ;;  %v894_v24 = vpop.permute.xlu1 %893  ;;  %v709_v35 = vpop.permute.xlu0 %708 }
  0xe1   : > { %v3549_v38 = vpack.c.bf16 %v452_v36, %v452_v36  ;;  %v3551_v39 = vpack.c.bf16 %v563_v37, %v563_v37  ;;  %v442_v40 = vpop.f32.mrf.mxu0  ;;  %v553_v41 = vpop.f32.mrf.mxu1  ;;  %v603_v42 = vsel %vm450_vm1, %v3550_v33, 0  ;;  %v597_v46 = vsel %vm450_vm1, %v3548_v32, 0 }
  0xe2   : > { %v898_v27 = vsel %vm897_vm4, %v894_v24, %v896_v13  ;;  %v902_v30 = vmul.f32 0.0, %v894_v24 }
  0xe3   : > { %v443_v44 = vpop.f32.mrf.mxu0  ;;  %v554_v45 = vpop.f32.mrf.mxu1  ;;  %3230 = vmatprep.subr.msk.bf16.mxu0 %vm450_vm1, %v3549_v38  ;;  %3232 = vmatprep.subr.msk.bf16.mxu1 %vm450_vm1, %v3551_v39 }
  0xe4   : > { %623 = vmatpush1.bf16.msra.mxu0 %v597_v46  ;;  %664 = vmatpush1.bf16.msra.mxu1 %v603_v42  ;;  %v707_v40 = vpop.permute.xlu1 %706 }
  0xe5   : > { %v711_v44 = vsel %vm710_vm5, %v707_v40, %v709_v35  ;;  %v715_v47 = vmul.f32 0.0, %v707_v40 }
  0xe7   : > { %3231 = vmatmul.mubr.msk.bf16.vlgmr.msra.gmra.mxu0 %vm592_vm2, %v573_v48  ;;  %3233 = vmatmul.mubr.msk.bf16.vlgmr.msra.gmra.mxu1 %vm592_vm2, %v573_v48  ;;  %vm1681_vm2 = vcmask 15360  }
  0xe8   : > { %1381 = vmatprep.mubr.bf16.mxu0 %v3617_v2  ;;  %1422 = vmatprep.mubr.bf16.mxu1 %v3617_v2 }
 0x1a7   : > { %v642_v60 = vpop.f32.mrf.mxu0  ;;  %v683_v61 = vpop.f32.mrf.mxu1 }
 0x1a8   : > { %v3804_v63 = vadd.f32 %v642_v60, %v580_v49  ;;  %v3823_v21 = vadd.f32 %v683_v61, %v580_v49 }
 0x1a9   : > { %v644_v0 = vpop.f32.mrf.mxu0  ;;  %v685_v1 = vpop.f32.mrf.mxu1 }
 0x1aa   : > { %v3806_v3 = vadd.f32 %v644_v0, %v580_v49  ;;  %v3444_v6 = vpack.c.bf16 %v3804_v63, %v3626_v5  ;;  %v3815_v14 = vadd.f32 %v685_v1, %v580_v49  ;;  %v839_v26 = vmul.f32 %v834_v18, %v3804_v63 }
 0x1ab   : > { %v646_v4 = vpop.f32.mrf.mxu0  ;;  %v687_v7 = vpop.f32.mrf.mxu1  ;;  %v903_v32 = vmul.f32 %v898_v27, %v3804_v63  ;;  %v867_v37 = vmul.f32 %v834_v18, %v3823_v21  ;;  %v931_v42 = vmul.f32 %v898_v27, %v3823_v21  ;;  %v716_v48 = vmul.f32 %v711_v44, %v3804_v63  ;;  %v3268_v27 = vld [vmem:[%s4482_s6 + $0x8] sm:$0xff] }
 0x1ac   : > { %v3445_v9 = vpack.c.bf16 %v3806_v3, %v3806_v3  ;;  %v840_v10 = vmul.f32 %v832_v62, %v3806_v3  ;;  %782 = vrot.lane.b32.xlu1 %v3444_v6, %s3627_s28  ;;  %v3819_v17 = vpack.c.bf16 %v3806_v3, %v3804_v63  ;;  %v904_v20 = vmul.f32 %v896_v13, %v3806_v3 }
 0x1ad   : > { %v647_v11 = vpop.f32.mrf.mxu0  ;;  %v688_v12 = vpop.f32.mrf.mxu1  ;;  %v3830_v25 = vpack.c.bf16 %v3815_v14, %v3823_v21  ;;  %v868_v29 = vmul.f32 %v832_v62, %v3815_v14  ;;  %v3448_v31 = vpack.c.bf16 %v839_v26, %v838_v23  ;;  %v932_v34 = vmul.f32 %v896_v13, %v3815_v14 }
 0x1ae   : > { %784 = vrot.lane.b32.xlu0 %v3445_v9, %s3627_s28  ;;  %v3449_v19 = vpack.c.bf16 %v840_v10, %v840_v10  ;;  %v3453_v28 = vpack.c.bf16 %v904_v20, %v904_v20  ;;  %v3452_v36 = vpack.c.bf16 %v903_v32, %v902_v30  ;;  %v717_v39 = vmul.f32 %v709_v35, %v3806_v3  ;;  %v3202_v20 = vld [vmem:[%s4483_s7 + $0x5] ss:$8 sm:$0x3] }
 0x1af   : > { %v3451_v33 = vpack.c.bf16 %v868_v29, %v868_v29  ;;  %v3455_v38 = vpack.c.bf16 %v932_v34, %v932_v34  ;;  %v3450_v41 = vpack.c.bf16 %v867_v37, %v838_v23  ;;  %v746_v46 = vmul.f32 %v709_v35, %v3815_v14 }
 0x1b0   : > { %1118 = vrot.lane.b32.xlu1 %v3819_v17, %s3625_s20  ;;  %v3441_v45 = vpack.c.bf16 %v717_v39, %v717_v39  ;;  %v3454_v49 = vpack.c.bf16 %v931_v42, %v902_v30  ;;  %v3440_v54 = vpack.c.bf16 %v716_v48, %v715_v47  ;;  %v1166_v56 = vmul.f32 %v1161_v53, %v3806_v3  ;;  %v1121_v30 = vpop.permute.xlu0 %1120 }
 0x1b1   : > { %v3443_v50 = vpack.c.bf16 %v746_v46, %v746_v46  ;;  %v3447_v57 = vpack.c.bf16 %v3815_v14, %v3815_v14  ;;  %v1165_v60 = vmul.f32 %v3784_v51, %v3804_v63  ;;  %v1194_v62 = vmul.f32 %v1161_v53, %v3815_v14 }
 0x1b2   : > { %854 = vrot.lane.b32.xlu0 %v3449_v19, %s3619_s15  ;;  %v1193_v0 = vmul.f32 %v3784_v51, %v3823_v21  ;;  %v1053_v4 = vmul.f32 %v1048_v43, %v3806_v3  ;;  %v1052_v6 = vmul.f32 %v3800_v58, %v3804_v63  ;;  %v1081_v8 = vmul.f32 %v1048_v43, %v3815_v14 }
 0x1b3   : > { %v3470_v61 = vpack.c.bf16 %v1166_v56, %v1165_v60  ;;  %v1080_v51 = vmul.f32 %v3800_v58, %v3823_v21  ;;  %v989_v10 = vmul.f32 %v984_v52, %v3806_v3  ;;  %v988_v11 = vmul.f32 %v3802_v59, %v3804_v63 }
 0x1b4   : > { %1143 = vrot.lane.b32.xlu1 %v3830_v25, %s3625_s20  ;;  %v3472_v1 = vpack.c.bf16 %v1194_v62, %v1193_v0  ;;  %v3462_v7 = vpack.c.bf16 %v1053_v4, %v1052_v6  ;;  %v1017_v13 = vmul.f32 %v984_v52, %v3815_v14  ;;  %v1016_v55 = vmul.f32 %v3802_v59, %v3823_v21  ;;  %v3199_v59 = vld [vmem:[%s4483_s7 + $0x1] ss:$8 sm:$0x3] }
 0x1b5   : > { %v3464_v9 = vpack.c.bf16 %v1081_v8, %v1080_v51  ;;  %v3458_v12 = vpack.c.bf16 %v989_v10, %v988_v11  ;;  %v745_v18 = vmul.f32 %v711_v44, %v3823_v21  ;;  %v3446_v23 = vpack.c.bf16 %v3823_v21, %v3626_v5 }
 0x1b6   : > { %918 = vrot.lane.b32.xlu0 %v3453_v28, %s3620_s16  ;;  %v3460_v19 = vpack.c.bf16 %v1017_v13, %v1016_v55  ;;  %v1582_v24 = vrot.slane %v3202_v20, %v3741_v16  ;;  %v1460_v26 = vrot.slane %v3199_v59, %v3741_v16  ;;  %v1586_v28 = vrot.slane %v3202_v20, %v3739_v15 }
 0x1b7   : > { %v3442_v58 = vpack.c.bf16 %v745_v18, %v715_v47  ;;  %v1464_v29 = vrot.slane %v3199_v59, %v3739_v15  ;;  %v1123_v6 = vrot.slane %v1121_v30, 4 }
 0x1b8   : > { %852 = vrot.lane.b32.xlu1 %v3448_v31, %s3619_s15  ;;  %v1146_v31 = vpop.permute.xlu0 %1145 }
 0x1ba   : > { %882 = vrot.lane.b32.xlu0 %v3451_v33, %s3619_s15 }
 0x1bc   : > { %916 = vrot.lane.b32.xlu1 %v3452_v36, %s3620_s16  ;;  %v1182_v32 = vpop.permute.xlu0 %1181 }
 0x1bd   : > { %v1184_v53 = vrot.slane %v1182_v32, 4 }
 0x1be   : > { %946 = vrot.lane.b32.xlu0 %v3455_v38, %s3620_s16 }
 0x1c0   : > { %880 = vrot.lane.b32.xlu1 %v3450_v41, %s3619_s15  ;;  %s3629_s15 = smov 30   ;;  %v1210_v33 = vpop.permute.xlu0 %1209 }
 0x1c1   : > { %v1212_v43 = vrot.slane %v1210_v33, 4 }
 0x1c2   : > { %731 = vrot.lane.b32.xlu0 %v3441_v45, %s3618_s14 }
 0x1c4   : > { %944 = vrot.lane.b32.xlu1 %v3454_v49, %s3620_s16  ;;  %s3630_s16 = smov 2   ;;  %v1069_v34 = vpop.permute.xlu0 %1068 }
 0x1c5   : > { %v1071_v52 = vrot.slane %v1069_v34, 4 }
 0x1c6   : > { %760 = vrot.lane.b32.xlu0 %v3443_v50, %s3618_s14 }
 0x1c8   : > { %729 = vrot.lane.b32.xlu1 %v3440_v54, %s3618_s14  ;;  %v1097_v35 = vpop.permute.xlu0 %1096 }
 0x1ca   : > { %809 = vrot.lane.b32.xlu0 %v3447_v57, %s3627_s28 }
 0x1cc   : > { %1179 = vrot.lane.b32.xlu1 %v3470_v61, %s3623_s19  ;;  %v3923_v37 = vpop.permute.xlu0 %1004 }
 0x1cd   : > { %v1007_v34 = vrot.slane %v3923_v37, 4 }
 0x1ce   : > { %1914 = vrot.lane.b32.xlu0 %v1582_v24, %s3628_s12 }
 0x1d0   : > { %1207 = vrot.lane.b32.xlu1 %v3472_v1, %s3623_s19  ;;  %s3633_s19 = smov 94   ;;  %v3925_v40 = vpop.permute.xlu0 %1032 }
 0x1d2   : > { %1801 = vrot.lane.b32.xlu0 %v1460_v26, %s3629_s15 }
 0x1d4   : > { %1066 = vrot.lane.b32.xlu1 %v3462_v7, %s3621_s17 }
 0x1d6   : > { %1737 = vrot.lane.b32.xlu0 %v1582_v24, %s3630_s16 }
 0x1d8   : > { %1094 = vrot.lane.b32.xlu1 %v3464_v9, %s3621_s17  ;;  %s3631_s17 = smov 98  }
 0x1da   : > { %1587 = vrot.lane.b32.xlu0 %v1582_v24, %s3631_s17 }
 0x1dc   : > { %1002 = vrot.lane.b32.xlu1 %v3458_v12, %s3622_s18 }
 0x1e0   : > { %1030 = vrot.lane.b32.xlu1 %v3460_v19, %s3622_s18  ;;  %s3632_s18 = smov 126   ;;  %v1148_v19 = vrot.slane %v1146_v31, 4 }
 0x1e1   : > { %1651 = vrot.lane.b32.xlu0 %v1460_v26, %s3632_s18 }
 0x1e4   : > { %758 = vrot.lane.b32.xlu1 %v3442_v58, %s3618_s14  ;;  %s3640_s14 = smov 125  }
 0x1e5   : > { %1465 = vrot.lane.b32.xlu0 %v1460_v26, %s3633_s19 }
 0x1e8   : > { %807 = vrot.lane.b32.xlu1 %v3446_v23, %s3627_s28  ;;  %v1099_v23 = vrot.slane %v1097_v35, 4 }
 0x1ec   : > { %1240 = vperm.xlu1 %3596, %v3268_v27  }
 0x1f0   : > { %1916 = vrot.lane.b32.xlu1 %v1586_v28, %s3628_s12 }
 0x1f4   : > { %1803 = vrot.lane.b32.xlu1 %v1464_v29, %s3629_s15 }
 0x1f8   : > { %1739 = vrot.lane.b32.xlu1 %v1586_v28, %s3630_s16 }
 0x1fc   : > { %1589 = vrot.lane.b32.xlu1 %v1586_v28, %s3631_s17 }
 0x200   : > { %1653 = vrot.lane.b32.xlu1 %v1464_v29, %s3632_s18 }
 0x204   : > { %1467 = vrot.lane.b32.xlu1 %v1464_v29, %s3633_s19 }
 0x21e   : > { %v3921_v36 = vpop.permute.xlu1 %782 }
 0x220   : > { %v3929_v42 = vpop.permute.xlu0 %784 }
 0x222   : > { %v1119_v38 = vpop.permute.xlu1 %1118 }
 0x223   : > { %v1122_v60 = vrot.slane %v1119_v38, 4 }
 0x224   : > { %v3935_v46 = vpop.permute.xlu0 %854 }
 0x225   : > { %v1124_v51 = vsel %vm450_vm1, %v1122_v60, %v1123_v6 }
 0x226   : > { %v1144_v39 = vpop.permute.xlu1 %1143  ;;  %v1126_v24 = vsel %vm1125_vm9, %v1119_v38, %v1124_v51 }
 0x227   : > { %v1147_v12 = vrot.slane %v1144_v39, 4 }
 0x228   : > { %v919_v48 = vpop.permute.xlu0 %918 }
 0x229   : > { %v1149_v28 = vsel %vm450_vm1, %v1147_v12, %v1148_v19  ;;  %v921_v32 = vrot.slane %v919_v48, 4 }
 0x22a   : > { %v3927_v41 = vpop.permute.xlu1 %852 }
 0x22b   : > { %v856_v35 = vrot.slane %v3927_v41, 4 }
 0x22c   : > { %v3941_v56 = vpop.permute.xlu0 %882 }
 0x22e   : > { %v3931_v44 = vpop.permute.xlu1 %916 }
 0x22f   : > { %v920_v59 = vrot.slane %v3931_v44, 4 }
 0x230   : > { %v947_v9 = vpop.permute.xlu0 %946 }
 0x232   : > { %v3933_v45 = vpop.permute.xlu1 %880 }
 0x233   : > { %v884_v6 = vrot.slane %v3933_v45, 4 }
 0x234   : > { %v732_v33 = vpop.permute.xlu0 %731 }
 0x236   : > { %v3937_v47 = vpop.permute.xlu1 %944 }
 0x23a   : > { %v3939_v49 = vpop.permute.xlu1 %729 }
 0x23e   : > { %v1180_v50 = vpop.permute.xlu1 %1179 }
 0x23f   : > { %v1183_v54 = vrot.slane %v1180_v50, 4 }
 0x241   : > { %v1185_v57 = vsel %vm450_vm1, %v1183_v54, %v1184_v53  ;;  %v1150_v53 = vsel %vm1125_vm9, %v1144_v39, %v1149_v28  ;;  %v922_v54 = vsel %vm450_vm1, %v920_v59, %v921_v32  ;;  %v949_v39 = vrot.slane %v947_v9, 4 }
 0x242   : > { %v1187_v61 = vsel %vm710_vm5, %v1180_v50, %v1185_v57  ;;  %v1208_v62 = vpop.permute.xlu1 %1207  ;;  %v857_v50 = vrot.slane %v3935_v46, 4  ;;  %v948_v57 = vrot.slane %v3937_v47, 4  ;;  %v924_v51 = vsel %vm923_vm8, %v3931_v44, %v922_v54 }
 0x243   : > { %v3285_v0 = vcombine.low %v1187_v61, %v1187_v61  ;;  %v3286_v1 = vcombine.high %v1187_v61, %v1187_v61  ;;  %v1211_v4 = vrot.slane %v1208_v62, 4  ;;  %v733_v61 = vrot.slane %v3939_v49, 4 }
 0x244   : > { %vm2375_vm9 = vcmask 367616  }
 0x245   : > { %v1213_v7 = vsel %vm450_vm1, %v1211_v4, %v1212_v43  ;;  %3289 = vmatprep.subr.msk.bf16.mxu0 %vm450_vm1, %v3286_v1  ;;  %v1338_v8 = vsel %vm450_vm1, %v3285_v0, 0  ;;  %v1035_v43 = vrot.slane %v3925_v40, 4  ;;  %v786_v0 = vrot.slane %v3921_v36, 4 }
 0x246   : > { %v1214_v10 = vsel %vm710_vm5, %v1208_v62, %v1213_v7  ;;  %1356 = vmatpush1.bf16.msra.mxu0 %v1338_v8  ;;  %v1067_v11 = vpop.permute.xlu1 %1066  ;;  %v787_v1 = vrot.slane %v3929_v42, 4  ;;  %v858_v4 = vsel %vm450_vm1, %v856_v35, %v857_v50  ;;  %v734_v7 = vrot.slane %v732_v33, 4 }
 0x247   : > { %v3287_v13 = vcombine.low %v1214_v10, %v1214_v10  ;;  %v3288_v55 = vcombine.high %v1214_v10, %v1214_v10  ;;  %v1070_v18 = vrot.slane %v1067_v11, 4  ;;  %v950_v40 = vsel %vm450_vm1, %v948_v57, %v949_v39  ;;  %v761_v10 = vpop.permute.xlu0 %760 }
 0x248   : > { %v736_v9 = vsel %vm450_vm1, %v733_v61, %v734_v7  ;;  %v788_v44 = vsel %vm450_vm1, %v786_v0, %v787_v1  ;;  %vm2349_vm5 = vcmask 678912  }
 0x249   : > { %v1072_v58 = vsel %vm450_vm1, %v1070_v18, %v1071_v52  ;;  %3291 = vmatprep.subr.msk.bf16.mxu1 %vm450_vm1, %v3288_v55  ;;  %v1344_v20 = vsel %vm450_vm1, %v3287_v13, 0  ;;  %v885_v52 = vrot.slane %v3941_v56, 4  ;;  %v860_v56 = vsel %vm859_vm7, %v3927_v41, %v858_v4 }
 0x24a   : > { %v1074_v26 = vsel %vm833_vm3, %v1067_v11, %v1072_v58  ;;  %1397 = vmatpush1.bf16.msra.mxu1 %v1344_v20  ;;  %v1095_v27 = vpop.permute.xlu1 %1094  ;;  %v3274_v58 = vcombine.high %v860_v56, %v924_v51  ;;  %v951_v20 = vsel %vm923_vm8, %v3937_v47, %v950_v40  ;;  %v790_v47 = vsel %vm789_vm10, %v3921_v36, %v788_v44 }
 0x24b   : > { %v3281_v29 = vcombine.low %v1074_v26, %v1126_v24  ;;  %v1098_v30 = vrot.slane %v1095_v27, 4  ;;  %v3282_v31 = vcombine.high %v1074_v26, %v1126_v24  ;;  %v886_v18 = vsel %vm450_vm1, %v884_v6, %v885_v52 }
 0x24c   : > { %v887_v28 = vsel %vm859_vm7, %v3933_v45, %v886_v18  ;;  %vm2227_vm7 = vcmask 629760   ;;  %vm2253_vm8 = vcmask 416768  }
 0x24d   : > { %v1100_v38 = vsel %vm450_vm1, %v1098_v30, %v1099_v23  ;;  %1357 = vmatprep.subr.bf16.mxu0 %v3282_v31  ;;  %v738_v23 = vsel %vm737_vm6, %v3939_v49, %v736_v9  ;;  %v763_v30 = vrot.slane %v761_v10, 4  ;;  %v3276_v31 = vcombine.high %v887_v28, %v951_v20 }
 0x24e   : > { %v1101_v60 = vsel %vm833_vm3, %v1095_v27, %v1100_v38  ;;  %1358 = vmatpush1.bf16.msra.mxu0 %v3281_v29  ;;  %v1003_v48 = vpop.permute.xlu1 %1002  ;;  %v3273_v27 = vcombine.low %v860_v56, %v924_v51  ;;  %v810_v29 = vpop.permute.xlu0 %809  ;;  %v3270_v49 = vcombine.high %v738_v23, %v790_v47  ;;  %v3275_v50 = vcombine.low %v887_v28, %v951_v20 }
 0x24f   : > { %v3283_v37 = vcombine.low %v1101_v60, %v1150_v53  ;;  %v1006_v62 = vrot.slane %v1003_v48, 4  ;;  %v3284_v46 = vcombine.high %v1101_v60, %v1150_v53  ;;  %v812_v33 = vrot.slane %v810_v29, 4  ;;  %v1217_v53 = vld [vmem:[%s4480_s4] sm:$0xf] }
 0x250   : > { %v3269_v35 = vcombine.low %v738_v23, %v790_v47  ;;  %vm1883_vm3 = vcmask 785408  }
 0x251   : > { %v1008_v8 = vsel %vm450_vm1, %v1006_v62, %v1007_v34  ;;  %1398 = vmatprep.subr.bf16.mxu1 %v3284_v46 }
 0x252   : > { %v1010_v11 = vsel %vm897_vm4, %v1003_v48, %v1008_v8  ;;  %1399 = vmatpush1.bf16.msra.mxu1 %v3283_v37  ;;  %v1031_v42 = vpop.permute.xlu1 %1030  ;;  %v4026_v4 = vpop.permute.xlu0 %1914 }
 0x253   : > { %v3277_v12 = vcombine.low %v3819_v17, %v1010_v11  ;;  %v1034_v13 = vrot.slane %v1031_v42, 4  ;;  %v3278_v55 = vcombine.high %v3819_v17, %v1010_v11 }
 0x255   : > { %v1036_v19 = vsel %vm450_vm1, %v1034_v13, %v1035_v43  ;;  %1359 = vmatprep.subr.bf16.mxu0 %v3278_v55 }
 0x256   : > { %v1037_v17 = vsel %vm897_vm4, %v1031_v42, %v1036_v19  ;;  %1360 = vmatpush1.bf16.msra.mxu0 %v3277_v12  ;;  %v759_v24 = vpop.permute.xlu1 %758  ;;  %v4028_v6 = vpop.permute.xlu0 %1801  ;;  %vm1547_vm4 = vcmask 261120  }
 0x257   : > { %v3279_v41 = vcombine.low %v3830_v25, %v1037_v17  ;;  %v3280_v59 = vcombine.high %v3830_v25, %v1037_v17  ;;  %v762_v26 = vrot.slane %v759_v24, 4  ;;  %1361 = vmatprep.subr.bf16.mxu0 %v3274_v58 }
 0x259   : > { %1400 = vmatprep.subr.bf16.mxu1 %v3280_v59  ;;  %v764_v25 = vsel %vm450_vm1, %v762_v26, %v763_v30 }
 0x25a   : > { %1362 = vmatpush1.bf16.msra.mxu0 %v3273_v27  ;;  %1401 = vmatpush1.bf16.msra.mxu1 %v3279_v41  ;;  %v808_v32 = vpop.permute.xlu1 %807  ;;  %v765_v38 = vsel %vm737_vm6, %v759_v24, %v764_v25  ;;  %v4030_v7 = vpop.permute.xlu0 %1737  ;;  %vm2413_vm6 = vcmask 1022976  }
 0x25b   : > { %v811_v34 = vrot.slane %v808_v32, 4  ;;  %1363 = vmatprep.subr.bf16.mxu0 %v3270_v49  ;;  %1402 = vmatprep.subr.bf16.mxu1 %v3276_v31 }
 0x25d   : > { %v813_v45 = vsel %vm450_vm1, %v811_v34, %v812_v33 }
 0x25e   : > { %v814_v36 = vsel %vm789_vm10, %v808_v32, %v813_v45  ;;  %1364 = vmatpush1.bf16.msra.mxu0 %v3269_v35  ;;  %1403 = vmatpush1.bf16.msra.mxu1 %v3275_v50  ;;  %v1588_v12 = vpop.permute.xlu0 %1587  ;;  %vm2439_vm10 = vcmask 23552  }
 0x25f   : > { %v3271_v54 = vcombine.low %v765_v38, %v814_v36  ;;  %v3272_v57 = vcombine.high %v765_v38, %v814_v36  ;;  %v1596_v26 = vmul.f32 0.0, %v1588_v12 }
 0x261   : > { %3290 = vmatmul.mubr.msk.bf16.vlgmr.msra.gmra.mxu0 %vm1333_vm11, %v1217_v53  ;;  %1404 = vmatprep.subr.bf16.mxu1 %v3272_v57 }
 0x262   : > { %1405 = vmatpush1.bf16.msra.mxu1 %v3271_v54  ;;  %2139 = vmatprep.mubr.bf16.mxu0 %v3617_v2  ;;  %v1652_v27 = vpop.permute.xlu0 %1651 }
 0x263   : > { %v1660_v31 = vmul.f32 0.0, %v1652_v27 }
 0x265   : > { %3292 = vmatmul.mubr.msk.bf16.vlgmr.msra.gmra.mxu1 %vm1333_vm11, %v1217_v53 }
 0x266   : > { %2180 = vmatprep.mubr.bf16.mxu1 %v3617_v2  ;;  %v1466_v38 = vpop.permute.xlu0 %1465 }
 0x267   : > { %v1241_v60 = vpop.permute.xlu1 %1240 }
 0x26b   : > { %v4007_v48 = vpop.permute.xlu1 %1916 }
 0x26c   : > { %v1925_v61 = vmul.f32 0.0, %v4007_v48 }
 0x26e   : > { %v3507_v37 = vpack.c.bf16 %v1925_v61, %v1925_v61 }
 0x26f   : > { %v4010_v62 = vpop.permute.xlu1 %1803 }
 0x270   : > { %1939 = vrot.lane.b32.xlu1 %v3507_v37, %s3633_s19  ;;  %v1812_v46 = vmul.f32 0.0, %v4010_v62 }
 0x272   : > { %v3499_v43 = vpack.c.bf16 %v1812_v46, %v1812_v46  ;;  %v1474_v46 = vmul.f32 0.0, %v1466_v38 }
 0x273   : > { %v4018_v0 = vpop.permute.xlu1 %1739 }
 0x274   : > { %1967 = vrot.lane.b32.xlu1 %v3507_v37, %s3633_s19  ;;  %v1748_v1 = vmul.f32 0.0, %v4018_v0 }
 0x276   : > { %v3495_v39 = vpack.c.bf16 %v1748_v1, %v1748_v1 }
 0x277   : > { %v1590_v51 = vpop.permute.xlu1 %1589 }
 0x278   : > { %1826 = vrot.lane.b32.xlu1 %v3499_v43, %s3631_s17  ;;  %v1592_v58 = vsel %vm1591_vm12, %v1588_v12, %v1590_v51 }
 0x27b   : > { %v1654_v20 = vpop.permute.xlu1 %1653 }
 0x27c   : > { %1878 = vrot.lane.b32.xlu1 %v3624_v22, %s3634_s22  ;;  %v1656_v47 = vsel %vm1655_vm13, %v1652_v27, %v1654_v20 }
 0x27f   : > { %v1468_v45 = vpop.permute.xlu1 %1467 }
 0x280   : > { %1854 = vrot.lane.b32.xlu1 %v3499_v43, %s3631_s17 }
 0x284   : > { %1903 = vrot.lane.b32.xlu1 %v3624_v22, %s3634_s22 }
 0x288   : > { %1762 = vrot.lane.b32.xlu1 %v3495_v39, %s3632_s18 }
 0x28c   : > { %1790 = vrot.lane.b32.xlu1 %v3495_v39, %s3632_s18 }
 0x321   : > { %v1383_v8 = vpop.f32.mrf.mxu0 }
 0x322   : > { %v4032_v52 = vadd.f32 %v1383_v8, %v1241_v60  ;;  %v1919_v8 = vsel %vm1495_vm15, %v4026_v4, %v4007_v48  ;;  %v1806_v48 = vsel %vm1617_vm0, %v4028_v6, %v4010_v62  ;;  %v1742_v62 = vsel %vm1681_vm2, %v4030_v7, %v4018_v0 }
 0x323   : > { %v1385_v40 = vpop.f32.mrf.mxu0 }
 0x324   : > { %v4034_v10 = vadd.f32 %v1385_v40, %v1241_v60  ;;  %v3480_v11 = vpack.c.bf16 %v4032_v52, %v3626_v5  ;;  %v1597_v29 = vmul.f32 %v1592_v58, %v4032_v52  ;;  %v1661_v33 = vmul.f32 %v1656_v47, %v4032_v52 }
 0x325   : > { %v1387_v42 = vpop.f32.mrf.mxu0  ;;  %v1424_v9 = vpop.f32.mrf.mxu1 }
 0x326   : > { %1540 = vrot.lane.b32.xlu0 %v3480_v11, %s3635_s23  ;;  %v3481_v13 = vpack.c.bf16 %v4034_v10, %v4034_v10  ;;  %v1598_v55 = vmul.f32 %v1590_v51, %v4034_v10  ;;  %v4047_v19 = vpack.c.bf16 %v4034_v10, %v4032_v52  ;;  %v4050_v17 = vadd.f32 %v1424_v9, %v1241_v60 }
 0x327   : > { %v1388_v56 = vpop.f32.mrf.mxu0  ;;  %v1426_v44 = vpop.f32.mrf.mxu1  ;;  %v1662_v41 = vmul.f32 %v1654_v20, %v4034_v10  ;;  %v3484_v32 = vpack.c.bf16 %v1597_v29, %v1596_v26  ;;  %v3488_v50 = vpack.c.bf16 %v1661_v33, %v1660_v31  ;;  %v1476_v53 = vmul.f32 %v1468_v45, %v4034_v10 }
 0x328   : > { %v4042_v18 = vadd.f32 %v1426_v44, %v1241_v60  ;;  %1542 = vrot.lane.b32.xlu1 %v3481_v13, %s3635_s23  ;;  %v3485_v24 = vpack.c.bf16 %v1598_v55, %v1598_v55  ;;  %v1625_v35 = vmul.f32 %v1592_v58, %v4050_v17  ;;  %v1689_v57 = vmul.f32 %v1656_v47, %v4050_v17 }
 0x329   : > { %v1428_v23 = vpop.f32.mrf.mxu1  ;;  %v3489_v30 = vpack.c.bf16 %v1662_v41, %v1662_v41  ;;  %v1470_v60 = vsel %vm1469_vm14, %v1466_v38, %v1468_v45  ;;  %v3477_v61 = vpack.c.bf16 %v1476_v53, %v1476_v53  ;;  %v1924_v40 = vmul.f32 %v1919_v8, %v4034_v10 }
 0x32a   : > { %1876 = vrot.lane.b32.xlu0 %v4047_v19, %s3634_s22  ;;  %v4058_v28 = vpack.c.bf16 %v4042_v18, %v4050_v17  ;;  %v1626_v49 = vmul.f32 %v1590_v51, %v4042_v18  ;;  %v1690_v34 = vmul.f32 %v1654_v20, %v4042_v18  ;;  %v3486_v54 = vpack.c.bf16 %v1625_v35, %v1596_v26 }
 0x32b   : > { %v1429_v59 = vpop.f32.mrf.mxu1  ;;  %v1504_v37 = vmul.f32 %v1468_v45, %v4042_v18  ;;  %v1475_v43 = vmul.f32 %v1470_v60, %v4032_v52  ;;  %v3490_v1 = vpack.c.bf16 %v1689_v57, %v1660_v31  ;;  %v3483_v11 = vpack.c.bf16 %v4042_v18, %v4042_v18  ;;  %v340_v31 = vld [vmem:[%s4483_s7] ss:$8 sm:$0x3] }
 0x32c   : > { %1612 = vrot.lane.b32.xlu1 %v3485_v24, %s3629_s15  ;;  %v3487_v25 = vpack.c.bf16 %v1626_v49, %v1626_v49  ;;  %v3491_v36 = vpack.c.bf16 %v1690_v34, %v1690_v34  ;;  %v1923_v42 = vmul.f32 %v4026_v4, %v4032_v52  ;;  %v1952_v12 = vmul.f32 %v1919_v8, %v4042_v18 }
 0x32d   : > { %v3479_v39 = vpack.c.bf16 %v1504_v37, %v1504_v37  ;;  %v3476_v51 = vpack.c.bf16 %v1475_v43, %v1474_v46  ;;  %v1951_v13 = vmul.f32 %v4026_v4, %v4050_v17  ;;  %v1811_v56 = vmul.f32 %v1806_v48, %v4034_v10 }
 0x32e   : > { %1901 = vrot.lane.b32.xlu0 %v4058_v28, %s3634_s22  ;;  %v3506_v9 = vpack.c.bf16 %v1924_v40, %v1923_v42  ;;  %v1810_v44 = vmul.f32 %v4028_v6, %v4032_v52  ;;  %v1839_v20 = vmul.f32 %v1806_v48, %v4042_v18  ;;  %v1838_v4 = vmul.f32 %v4028_v6, %v4050_v17 }
 0x32f   : > { %v3508_v55 = vpack.c.bf16 %v1952_v12, %v1951_v13  ;;  %v1747_v24 = vmul.f32 %v1742_v62, %v4034_v10  ;;  %v1746_v41 = vmul.f32 %v4030_v7, %v4032_v52  ;;  %v1775_v26 = vmul.f32 %v1742_v62, %v4042_v18 }
 0x330   : > { %1676 = vrot.lane.b32.xlu1 %v3489_v30, %s3630_s16  ;;  %v3498_v58 = vpack.c.bf16 %v1811_v56, %v1810_v44  ;;  %v3500_v23 = vpack.c.bf16 %v1839_v20, %v1838_v4  ;;  %v1774_v0 = vmul.f32 %v4030_v7, %v4050_v17  ;;  %v1503_v29 = vmul.f32 %v1470_v60, %v4050_v17  ;;  %v3203_v30 = vld [vmem:[%s4483_s7 + $0x6] ss:$8 sm:$0x3]  ;;  %v3330_v7 = vld [vmem:[%s4482_s6 + $0x10] sm:$0xff] }
 0x331   : > { %v3494_v59 = vpack.c.bf16 %v1747_v24, %v1746_v41  ;;  %v3482_v47 = vpack.c.bf16 %v4050_v17, %v3626_v5  ;;  %v2340_v49 = vrot.slane %v3203_v30, %v3741_v16  ;;  %v2344_v33 = vrot.slane %v3203_v30, %v3739_v15 }
 0x332   : > { %1610 = vrot.lane.b32.xlu0 %v3484_v32, %s3629_s15  ;;  %v3496_v27 = vpack.c.bf16 %v1775_v26, %v1774_v0  ;;  %v3478_v6 = vpack.c.bf16 %v1503_v29, %v1474_v46  ;;  %v2218_v32 = vrot.slane %v340_v31, %v3741_v16  ;;  %v1940_v16 = vpop.permute.xlu1 %1939 }
 0x333   : > { %v1942_v40 = vrot.slane %v1940_v16, 4 }
 0x334   : > { %1640 = vrot.lane.b32.xlu1 %v3487_v25, %s3629_s15  ;;  %v2222_v25 = vrot.slane %v340_v31, %v3739_v15 }
 0x336   : > { %1674 = vrot.lane.b32.xlu0 %v3488_v50, %s3630_s16  ;;  %v1968_v15 = vpop.permute.xlu1 %1967 }
 0x337   : > { %v1970_v56 = vrot.slane %v1968_v15, 4 }
 0x338   : > { %1704 = vrot.lane.b32.xlu1 %v3491_v36, %s3630_s16 }
 0x33a   : > { %1638 = vrot.lane.b32.xlu0 %v3486_v54, %s3629_s15  ;;  %s3641_s15 = smov 77   ;;  %v1827_v34 = vpop.permute.xlu1 %1826 }
 0x33b   : > { %v1829_v62 = vrot.slane %v1827_v34, 4 }
 0x33c   : > { %1490 = vrot.lane.b32.xlu1 %v3477_v61, %s3628_s12 }
 0x33e   : > { %1702 = vrot.lane.b32.xlu0 %v3490_v1, %s3630_s16  ;;  %v1879_v50 = vpop.permute.xlu1 %1878 }
 0x33f   : > { %v1881_v12 = vrot.slane %v1879_v50, 4 }
 0x340   : > { %1518 = vrot.lane.b32.xlu1 %v3479_v39, %s3628_s12 }
 0x342   : > { %1488 = vrot.lane.b32.xlu0 %v3476_v51, %s3628_s12  ;;  %v4149_v35 = vpop.permute.xlu1 %1854 }
 0x344   : > { %1567 = vrot.lane.b32.xlu1 %v3483_v11, %s3635_s23 }
 0x346   : > { %1937 = vrot.lane.b32.xlu0 %v3506_v9, %s3633_s19  ;;  %v1904_v45 = vpop.permute.xlu1 %1903 }
 0x347   : > { %v1906_v24 = vrot.slane %v1904_v45, 4 }
 0x348   : > { %2672 = vrot.lane.b32.xlu1 %v2340_v49, %s3636_s10 }
 0x34a   : > { %1965 = vrot.lane.b32.xlu0 %v3508_v55, %s3633_s19  ;;  %v4153_v36 = vpop.permute.xlu1 %1762  ;;  %s3643_s19 = smov 48  }
 0x34c   : > { %2559 = vrot.lane.b32.xlu1 %v2218_v32, %s3637_s11 }
 0x34e   : > { %1824 = vrot.lane.b32.xlu0 %v3498_v58, %s3631_s17  ;;  %v4155_v57 = vpop.permute.xlu1 %1790 }
 0x352   : > { %1852 = vrot.lane.b32.xlu0 %v3500_v23, %s3631_s17 }
 0x356   : > { %1760 = vrot.lane.b32.xlu0 %v3494_v59, %s3632_s18 }
 0x35a   : > { %1788 = vrot.lane.b32.xlu0 %v3496_v27, %s3632_s18  ;;  %s3642_s18 = smov 80  }
 0x35e   : > { %1516 = vrot.lane.b32.xlu0 %v3478_v6, %s3628_s12  ;;  %s3638_s12 = smov 3  }
 0x35f   : > { %2495 = vrot.lane.b32.xlu1 %v2340_v49, %s3638_s12 }
 0x362   : > { %1565 = vrot.lane.b32.xlu0 %v3482_v47, %s3635_s23 }
 0x363   : > { %2345 = vrot.lane.b32.xlu1 %v2340_v49, %s3639_s13 }
 0x366   : > { %1999 = vperm.xlu0 %3595, %v3330_v7   ;;  %v1857_v7 = vrot.slane %v4149_v35, 4 }
 0x367   : > { %2409 = vrot.lane.b32.xlu1 %v2218_v32, %s3640_s14 }
 0x36a   : > { %2674 = vrot.lane.b32.xlu0 %v2344_v33, %s3636_s10 }
 0x36b   : > { %2223 = vrot.lane.b32.xlu1 %v2218_v32, %s3641_s15 }
 0x36e   : > { %2561 = vrot.lane.b32.xlu0 %v2222_v25, %s3637_s11 }
 0x372   : > { %2497 = vrot.lane.b32.xlu0 %v2344_v33, %s3638_s12 }
 0x376   : > { %2347 = vrot.lane.b32.xlu0 %v2344_v33, %s3639_s13 }
 0x37a   : > { %2411 = vrot.lane.b32.xlu0 %v2222_v25, %s3640_s14 }
 0x37e   : > { %2225 = vrot.lane.b32.xlu0 %v2222_v25, %s3641_s15 }
 0x398   : > { %v4151_v38 = vpop.permute.xlu0 %1540 }
 0x39a   : > { %v4159_v61 = vpop.permute.xlu1 %1542 }
 0x39c   : > { %v1877_v53 = vpop.permute.xlu0 %1876 }
 0x39d   : > { %v1880_v48 = vrot.slane %v1877_v53, 4 }
 0x39e   : > { %v4165_v43 = vpop.permute.xlu1 %1612 }
 0x39f   : > { %v1882_v41 = vsel %vm450_vm1, %v1880_v48, %v1881_v12 }
 0x3a0   : > { %v1902_v54 = vpop.permute.xlu0 %1901  ;;  %v1884_v31 = vsel %vm1883_vm3, %v1877_v53, %v1882_v41 }
 0x3a1   : > { %v1905_v27 = vrot.slane %v1902_v54, 4 }
 0x3a2   : > { %v1677_v39 = vpop.permute.xlu1 %1676 }
 0x3a3   : > { %v1907_v16 = vsel %vm450_vm1, %v1905_v27, %v1906_v24  ;;  %v1679_v45 = vrot.slane %v1677_v39, 4 }
 0x3a4   : > { %v4157_v60 = vpop.permute.xlu0 %1610 }
 0x3a5   : > { %v1614_v35 = vrot.slane %v4157_v60, 4 }
 0x3a6   : > { %v4171_v42 = vpop.permute.xlu1 %1640 }
 0x3a7   : > { %v1643_v41 = vrot.slane %v4171_v42, 4 }
 0x3a8   : > { %v4161_v37 = vpop.permute.xlu0 %1674 }
 0x3a9   : > { %v1678_v32 = vrot.slane %v4161_v37, 4 }
 0x3aa   : > { %v1705_v59 = vpop.permute.xlu1 %1704 }
 0x3ab   : > { %v1680_v12 = vsel %vm450_vm1, %v1678_v32, %v1679_v45 }
 0x3ac   : > { %v4163_v46 = vpop.permute.xlu0 %1638 }
 0x3b0   : > { %v4167_v1 = vpop.permute.xlu0 %1702 }
 0x3b1   : > { %v1706_v48 = vrot.slane %v4167_v1, 4 }
 0x3b4   : > { %v4169_v8 = vpop.permute.xlu0 %1488 }
 0x3b5   : > { %v1492_v39 = vrot.slane %v4169_v8, 4 }
 0x3b8   : > { %v1938_v51 = vpop.permute.xlu0 %1937 }
 0x3b9   : > { %v1941_v11 = vrot.slane %v1938_v51, 4 }
 0x3bb   : > { %v1943_v9 = vsel %vm450_vm1, %v1941_v11, %v1942_v40  ;;  %v1765_v40 = vrot.slane %v4153_v36, 4  ;;  %v1615_v11 = vrot.slane %v4165_v43, 4 }
 0x3bc   : > { %v1945_v13 = vsel %vm1469_vm14, %v1938_v51, %v1943_v9  ;;  %v1966_v55 = vpop.permute.xlu0 %1965  ;;  %v1491_v51 = vpop.permute.xlu1 %1490  ;;  %v1908_v9 = vsel %vm1883_vm3, %v1902_v54, %v1907_v16  ;;  %v1707_v54 = vrot.slane %v1705_v59, 4 }
 0x3bd   : > { %v3347_v44 = vcombine.low %v1945_v13, %v1945_v13  ;;  %v3348_v58 = vcombine.high %v1945_v13, %v1945_v13  ;;  %v1969_v20 = vrot.slane %v1966_v55, 4 }
 0x3bf   : > { %v1971_v4 = vsel %vm450_vm1, %v1969_v20, %v1970_v56  ;;  %3351 = vmatprep.subr.msk.bf16.mxu0 %vm450_vm1, %v3348_v58  ;;  %v2096_v23 = vsel %vm450_vm1, %v3347_v44, 0  ;;  %v1793_v44 = vrot.slane %v4155_v57, 4  ;;  %v1544_v58 = vrot.slane %v4151_v38, 4 }
 0x3c0   : > { %v1972_v26 = vsel %vm1469_vm14, %v1966_v55, %v1971_v4  ;;  %v1825_v0 = vpop.permute.xlu0 %1824  ;;  %2114 = vmatpush1.bf16.msra.mxu0 %v2096_v23  ;;  %v1545_v20 = vrot.slane %v4159_v61, 4  ;;  %v1642_v4 = vrot.slane %v4163_v46, 4  ;;  %v1493_v23 = vrot.slane %v1491_v51, 4 }
 0x3c1   : > { %v3349_v29 = vcombine.low %v1972_v26, %v1972_v26  ;;  %v3350_v6 = vcombine.high %v1972_v26, %v1972_v26  ;;  %v1828_v47 = vrot.slane %v1825_v0, 4  ;;  %v1682_v26 = vsel %vm1681_vm2, %v4161_v37, %v1680_v12 }
 0x3c2   : > { %v1708_v57 = vsel %vm450_vm1, %v1706_v48, %v1707_v54  ;;  %v1494_v59 = vsel %vm450_vm1, %v1492_v39, %v1493_v23  ;;  %v1546_v37 = vsel %vm450_vm1, %v1544_v58, %v1545_v20  ;;  %v3329_v48 = vld [vmem:[%s4480_s4 + $0x4] sm:$0xf] }
 0x3c3   : > { %v1830_v30 = vsel %vm450_vm1, %v1828_v47, %v1829_v62  ;;  %3353 = vmatprep.subr.msk.bf16.mxu1 %vm450_vm1, %v3350_v6  ;;  %v2102_v49 = vsel %vm450_vm1, %v3349_v29, 0  ;;  %v1616_v62 = vsel %vm450_vm1, %v1614_v35, %v1615_v11  ;;  %v1496_v32 = vsel %vm1495_vm15, %v4169_v8, %v1494_v59 }
 0x3c4   : > { %v1832_v33 = vsel %vm1591_vm12, %v1825_v0, %v1830_v30  ;;  %v1853_v25 = vpop.permute.xlu0 %1852  ;;  %2155 = vmatpush1.bf16.msra.mxu1 %v2102_v49  ;;  %v1519_v0 = vpop.permute.xlu1 %1518  ;;  %v1618_v42 = vsel %vm1617_vm0, %v4157_v60, %v1616_v62  ;;  %v1644_v49 = vsel %vm450_vm1, %v1642_v4, %v1643_v41 }
 0x3c5   : > { %v3343_v15 = vcombine.low %v1832_v33, %v1884_v31  ;;  %v3344_v34 = vcombine.high %v1832_v33, %v1884_v31  ;;  %v1856_v50 = vrot.slane %v1853_v25, 4  ;;  %v3336_v30 = vcombine.high %v1618_v42, %v1682_v26 }
 0x3c6   : > { %v1709_v31 = vsel %vm1681_vm2, %v4167_v1, %v1708_v57  ;;  %v1548_v1 = vsel %vm1547_vm4, %v4151_v38, %v1546_v37  ;;  %v1521_v8 = vrot.slane %v1519_v0, 4 }
 0x3c7   : > { %v1858_v53 = vsel %vm450_vm1, %v1856_v50, %v1857_v7  ;;  %2115 = vmatprep.subr.bf16.mxu0 %v3344_v34  ;;  %v1645_v34 = vsel %vm1617_vm0, %v4163_v46, %v1644_v49  ;;  %v3332_v51 = vcombine.high %v1496_v32, %v1548_v1 }
 0x3c8   : > { %v1859_v13 = vsel %vm1591_vm12, %v1853_v25, %v1858_v53  ;;  %v1761_v55 = vpop.permute.xlu0 %1760  ;;  %2116 = vmatpush1.bf16.msra.mxu0 %v3343_v15  ;;  %v3335_v15 = vcombine.low %v1618_v42, %v1682_v26  ;;  %v1568_v50 = vpop.permute.xlu1 %1567  ;;  %v3338_v45 = vcombine.high %v1645_v34, %v1709_v31  ;;  %v3337_v53 = vcombine.low %v1645_v34, %v1709_v31 }
 0x3c9   : > { %v3345_v36 = vcombine.low %v1859_v13, %v1908_v9  ;;  %v3346_v56 = vcombine.high %v1859_v13, %v1908_v9  ;;  %v1764_v43 = vrot.slane %v1761_v55, 4  ;;  %v1570_v11 = vrot.slane %v1568_v50, 4 }
 0x3ca   : > { %v3331_v9 = vcombine.low %v1496_v32, %v1548_v1  ;;  %vm2641_vm12 = vcmask 654336  }
 0x3cb   : > { %v1766_v24 = vsel %vm450_vm1, %v1764_v43, %v1765_v40  ;;  %2156 = vmatprep.subr.bf16.mxu1 %v3346_v56 }
 0x3cc   : > { %v1768_v27 = vsel %vm1655_vm13, %v1761_v55, %v1766_v24  ;;  %v1789_v61 = vpop.permute.xlu0 %1788  ;;  %2157 = vmatpush1.bf16.msra.mxu1 %v3345_v36  ;;  %v4257_v23 = vpop.permute.xlu1 %2672 }
 0x3cd   : > { %v3339_v29 = vcombine.low %v4047_v19, %v1768_v27  ;;  %v3340_v6 = vcombine.high %v4047_v19, %v1768_v27  ;;  %v1792_v47 = vrot.slane %v1789_v61, 4 }
 0x3cf   : > { %v1794_v7 = vsel %vm450_vm1, %v1792_v47, %v1793_v44  ;;  %2117 = vmatprep.subr.bf16.mxu0 %v3340_v6 }
 0x3d0   : > { %v1795_v19 = vsel %vm1655_vm13, %v1789_v61, %v1794_v7  ;;  %v1517_v33 = vpop.permute.xlu0 %1516  ;;  %2118 = vmatpush1.bf16.msra.mxu0 %v3339_v29  ;;  %v4259_v24 = vpop.permute.xlu1 %2559  ;;  %vm2305_vm13 = vcmask 392192  }
 0x3d1   : > { %v3341_v60 = vcombine.low %v4058_v28, %v1795_v19  ;;  %v3342_v25 = vcombine.high %v4058_v28, %v1795_v19  ;;  %v1520_v16 = vrot.slane %v1517_v33, 4  ;;  %2119 = vmatprep.subr.bf16.mxu0 %v3336_v30 }
 0x3d3   : > { %2158 = vmatprep.subr.bf16.mxu1 %v3342_v25  ;;  %v1522_v28 = vsel %vm450_vm1, %v1520_v16, %v1521_v8 }
 0x3d4   : > { %v1566_v40 = vpop.permute.xlu0 %1565  ;;  %2120 = vmatpush1.bf16.msra.mxu0 %v3335_v15  ;;  %2159 = vmatpush1.bf16.msra.mxu1 %v3341_v60  ;;  %v1523_v38 = vsel %vm1495_vm15, %v1517_v33, %v1522_v28  ;;  %v4261_v41 = vpop.permute.xlu1 %2495 }
 0x3d5   : > { %v1569_v35 = vrot.slane %v1566_v40, 4  ;;  %2121 = vmatprep.subr.bf16.mxu0 %v3332_v51  ;;  %2160 = vmatprep.subr.bf16.mxu1 %v3338_v45 }
 0x3d7   : > { %v1571_v46 = vsel %vm450_vm1, %v1569_v35, %v1570_v11 }
 0x3d8   : > { %v1572_v12 = vsel %vm1547_vm4, %v1566_v40, %v1571_v46  ;;  %2122 = vmatpush1.bf16.msra.mxu0 %v3331_v9  ;;  %2161 = vmatpush1.bf16.msra.mxu1 %v3337_v53  ;;  %v2346_v6 = vpop.permute.xlu1 %2345 }
 0x3d9   : > { %v3333_v13 = vcombine.low %v1523_v38, %v1572_v12  ;;  %v3334_v55 = vcombine.high %v1523_v38, %v1572_v12  ;;  %v2354_v15 = vmul.f32 0.0, %v2346_v6 }
 0x3db   : > { %3352 = vmatmul.mubr.msk.bf16.vlgmr.msra.gmra.mxu0 %vm1333_vm11, %v3329_v48  ;;  %2162 = vmatprep.subr.bf16.mxu1 %v3334_v55 }
 0x3dc   : > { %2163 = vmatpush1.bf16.msra.mxu1 %v3333_v13  ;;  %2897 = vmatprep.mubr.bf16.mxu0 %v3617_v2  ;;  %v2410_v34 = vpop.permute.xlu1 %2409 }
 0x3dd   : > { %v2418_v40 = vmul.f32 0.0, %v2410_v34 }
 0x3df   : > { %3354 = vmatmul.mubr.msk.bf16.vlgmr.msra.gmra.mxu1 %vm1333_vm11, %v3329_v48 }
 0x3e0   : > { %2938 = vmatprep.mubr.bf16.mxu1 %v3617_v2  ;;  %v2224_v12 = vpop.permute.xlu1 %2223 }
 0x3e1   : > { %v2000_v39 = vpop.permute.xlu0 %1999 }
 0x3e5   : > { %v4238_v36 = vpop.permute.xlu0 %2674 }
 0x3e6   : > { %v2683_v56 = vmul.f32 0.0, %v4238_v36 }
 0x3e8   : > { %v3543_v43 = vpack.c.bf16 %v2683_v56, %v2683_v56 }
 0x3e9   : > { %v4241_v44 = vpop.permute.xlu0 %2561 }
 0x3ea   : > { %2697 = vrot.lane.b32.xlu0 %v3543_v43, %s3641_s15  ;;  %v2570_v58 = vmul.f32 0.0, %v4241_v44 }
 0x3ec   : > { %v3535_v20 = vpack.c.bf16 %v2570_v58, %v2570_v58 }
 0x3ed   : > { %v4249_v54 = vpop.permute.xlu0 %2497 }
 0x3ee   : > { %2725 = vrot.lane.b32.xlu0 %v3543_v43, %s3641_s15  ;;  %v2506_v62 = vmul.f32 0.0, %v4249_v54 }
 0x3f0   : > { %v3531_v4 = vpack.c.bf16 %v2506_v62, %v2506_v62 }
 0x3f1   : > { %v2348_v0 = vpop.permute.xlu0 %2347 }
 0x3f2   : > { %2584 = vrot.lane.b32.xlu0 %v3535_v20, %s3639_s13  ;;  %v2350_v31 = vsel %vm2349_vm5, %v2346_v6, %v2348_v0 }
 0x3f5   : > { %v2412_v32 = vpop.permute.xlu0 %2411 }
 0x3f6   : > { %2636 = vrot.lane.b32.xlu0 %v3624_v22, %s3642_s18  ;;  %v2414_v45 = vsel %vm2413_vm6, %v2410_v34, %v2412_v32 }
 0x3f9   : > { %v2226_v38 = vpop.permute.xlu0 %2225 }
 0x3fa   : > { %2612 = vrot.lane.b32.xlu0 %v3535_v20, %s3639_s13  ;;  %v2228_v56 = vsel %vm2227_vm7, %v2224_v12, %v2226_v38  ;;  %v2232_v20 = vmul.f32 0.0, %v2224_v12 }
 0x3fe   : > { %2661 = vrot.lane.b32.xlu0 %v3624_v22, %s3642_s18 }
 0x402   : > { %2520 = vrot.lane.b32.xlu0 %v3531_v4, %s3640_s14 }
 0x406   : > { %2548 = vrot.lane.b32.xlu0 %v3531_v4, %s3640_s14 }
 0x49b   : > { %v2141_v26 = vpop.f32.mrf.mxu0 }
 0x49c   : > { %v4263_v57 = vadd.f32 %v2141_v26, %v2000_v39 }
 0x49d   : > { %v2143_v27 = vpop.f32.mrf.mxu0 }
 0x49e   : > { %v4265_v61 = vadd.f32 %v2143_v27, %v2000_v39  ;;  %v3516_v22 = vpack.c.bf16 %v4263_v57, %v3626_v5  ;;  %v2355_v50 = vmul.f32 %v2350_v31, %v4263_v57  ;;  %v2419_v28 = vmul.f32 %v2414_v45, %v4263_v57 }
 0x49f   : > { %v2145_v59 = vpop.f32.mrf.mxu0  ;;  %v2182_v29 = vpop.f32.mrf.mxu1  ;;  %v2233_v62 = vmul.f32 %v2228_v56, %v4263_v57 }
 0x4a0   : > { %2298 = vrot.lane.b32.xlu1 %v3516_v22, %s3643_s19  ;;  %v3517_v47 = vpack.c.bf16 %v4265_v61, %v4265_v61  ;;  %v2356_v30 = vmul.f32 %v2348_v0, %v4265_v61  ;;  %v4278_v7 = vpack.c.bf16 %v4265_v61, %v4263_v57  ;;  %v4281_v33 = vadd.f32 %v2182_v29, %v2000_v39 }
 0x4a1   : > { %v2146_v42 = vpop.f32.mrf.mxu0  ;;  %v2184_v37 = vpop.f32.mrf.mxu1  ;;  %v2420_v25 = vmul.f32 %v2412_v32, %v4265_v61  ;;  %v3520_v11 = vpack.c.bf16 %v2355_v50, %v2354_v15  ;;  %v3524_v9 = vpack.c.bf16 %v2419_v28, %v2418_v40  ;;  %v2234_v13 = vmul.f32 %v2226_v38, %v4265_v61 }
 0x4a2   : > { %v4273_v49 = vadd.f32 %v2184_v37, %v2000_v39  ;;  %2300 = vrot.lane.b32.xlu0 %v3517_v47, %s3643_s19  ;;  %v3521_v60 = vpack.c.bf16 %v2356_v30, %v2356_v30  ;;  %v2383_v46 = vmul.f32 %v2350_v31, %v4281_v33  ;;  %v2447_v39 = vmul.f32 %v2414_v45, %v4281_v33  ;;  %v3419_v42 = vld [vmem:[%s4482_s6 + $0x20] sm:$0xff] }
 0x4a3   : > { %v2186_v19 = vpop.f32.mrf.mxu1  ;;  %v3525_v8 = vpack.c.bf16 %v2420_v25, %v2420_v25  ;;  %v3513_v43 = vpack.c.bf16 %v2234_v13, %v2234_v13  ;;  %v3512_v27 = vpack.c.bf16 %v2233_v62, %v2232_v20  ;;  %v2681_v29 = vmul.f32 %v4257_v23, %v4263_v57 }
 0x4a4   : > { %2634 = vrot.lane.b32.xlu1 %v4278_v7, %s3642_s18  ;;  %v4289_v1 = vpack.c.bf16 %v4273_v49, %v4281_v33  ;;  %v2384_v51 = vmul.f32 %v2348_v0, %v4273_v49  ;;  %v2448_v53 = vmul.f32 %v2412_v32, %v4273_v49  ;;  %v3522_v55 = vpack.c.bf16 %v2383_v46, %v2354_v15 }
 0x4a5   : > { %v2187_v16 = vpop.f32.mrf.mxu1  ;;  %v2262_v58 = vmul.f32 %v2226_v38, %v4273_v49  ;;  %v3526_v4 = vpack.c.bf16 %v2447_v39, %v2418_v40  ;;  %v2677_v0 = vsel %vm2253_vm8, %v4257_v23, %v4238_v36  ;;  %v3519_v59 = vpack.c.bf16 %v4273_v49, %v4273_v49  ;;  %v3392_v40 = vld [vmem:[%s4482_s6 + $0x18] sm:$0xff] }
 0x4a6   : > { %2370 = vrot.lane.b32.xlu0 %v3521_v60, %s3637_s11  ;;  %v3523_v35 = vpack.c.bf16 %v2384_v51, %v2384_v51  ;;  %v3527_v48 = vpack.c.bf16 %v2448_v53, %v2448_v53  ;;  %v2682_v22 = vmul.f32 %v2677_v0, %v4265_v61  ;;  %v2710_v47 = vmul.f32 %v2677_v0, %v4273_v49 }
 0x4a7   : > { %v3515_v26 = vpack.c.bf16 %v2262_v58, %v2262_v58  ;;  %v2564_v36 = vsel %vm2375_vm9, %v4259_v24, %v4241_v44  ;;  %v2709_v37 = vmul.f32 %v4257_v23, %v4281_v33  ;;  %v2568_v32 = vmul.f32 %v4259_v24, %v4263_v57 }
 0x4a8   : > { %2659 = vrot.lane.b32.xlu1 %v4289_v1, %s3642_s18  ;;  %v3542_v6 = vpack.c.bf16 %v2682_v22, %v2681_v29  ;;  %v2569_v31 = vmul.f32 %v2564_v36, %v4265_v61  ;;  %v2597_v19 = vmul.f32 %v2564_v36, %v4273_v49  ;;  %v2500_v60 = vsel %vm2439_vm10, %v4261_v41, %v4249_v54 }
 0x4a9   : > { %v3544_v30 = vpack.c.bf16 %v2710_v47, %v2709_v37  ;;  %v2596_v23 = vmul.f32 %v4259_v24, %v4281_v33  ;;  %v2505_v16 = vmul.f32 %v2500_v60, %v4265_v61  ;;  %v2504_v15 = vmul.f32 %v4261_v41, %v4263_v57 }
 0x4aa   : > { %2434 = vrot.lane.b32.xlu0 %v3525_v8, %s3638_s12  ;;  %v3534_v44 = vpack.c.bf16 %v2569_v31, %v2568_v32  ;;  %v2533_v50 = vmul.f32 %v2500_v60, %v4273_v49  ;;  %v2532_v54 = vmul.f32 %v4261_v41, %v4281_v33  ;;  %v2261_v8 = vmul.f32 %v2228_v56, %v4281_v33 }
 0x4ab   : > { %v3536_v25 = vpack.c.bf16 %v2597_v19, %v2596_v23  ;;  %v3530_v34 = vpack.c.bf16 %v2505_v16, %v2504_v15  ;;  %v3518_v51 = vpack.c.bf16 %v4281_v33, %v3626_v5 }
 0x4ac   : > { %2368 = vrot.lane.b32.xlu1 %v3520_v11, %s3637_s11  ;;  %v3532_v45 = vpack.c.bf16 %v2533_v50, %v2532_v54  ;;  %v3514_v24 = vpack.c.bf16 %v2261_v8, %v2232_v20  ;;  %v2698_v11 = vpop.permute.xlu0 %2697 }
 0x4ae   : > { %2398 = vrot.lane.b32.xlu0 %v3523_v35, %s3637_s11 }
 0x4b0   : > { %2432 = vrot.lane.b32.xlu1 %v3524_v9, %s3638_s12  ;;  %v2726_v41 = vpop.permute.xlu0 %2725 }
 0x4b1   : > { %v2728_v36 = vrot.slane %v2726_v41, 4 }
 0x4b2   : > { %2462 = vrot.lane.b32.xlu0 %v3527_v48, %s3638_s12 }
 0x4b4   : > { %2396 = vrot.lane.b32.xlu1 %v3522_v55, %s3637_s11  ;;  %v2585_v28 = vpop.permute.xlu0 %2584  ;;  %s334_s11 = scalar_lea.vmem %s4484_s8, %s3437_s29 }
 0x4b5   : > { %v2587_v31 = vrot.slane %v2585_v28, 4 }
 0x4b6   : > { %2248 = vrot.lane.b32.xlu0 %v3513_v43, %s3636_s10 }
 0x4b8   : > { %2460 = vrot.lane.b32.xlu1 %v3526_v4, %s3638_s12  ;;  %v2637_v35 = vpop.permute.xlu0 %2636 }
 0x4ba   : > { %2276 = vrot.lane.b32.xlu0 %v3515_v26, %s3636_s10  ;;  %v2700_v26 = vrot.slane %v2698_v11, 4 }
 0x4bc   : > { %2246 = vrot.lane.b32.xlu1 %v3512_v27, %s3636_s10  ;;  %v4361_v53 = vpop.permute.xlu0 %2612 }
 0x4be   : > { %2325 = vrot.lane.b32.xlu0 %v3519_v59, %s3643_s19  ;;  %v2639_v59 = vrot.slane %v2637_v35, 4 }
 0x4c0   : > { %2695 = vrot.lane.b32.xlu1 %v3542_v6, %s3641_s15  ;;  %v2662_v9 = vpop.permute.xlu0 %2661 }
 0x4c1   : > { %v2664_v19 = vrot.slane %v2662_v9, 4 }
 0x4c2   : > { %2976 = vperm.xlu0 %3595, %v3419_v42  }
 0x4c4   : > { %2723 = vrot.lane.b32.xlu1 %v3544_v30, %s3641_s15  ;;  %v4365_v38 = vpop.permute.xlu0 %2520 }
 0x4c8   : > { %2582 = vrot.lane.b32.xlu1 %v3534_v44, %s3639_s13  ;;  %v4367_v48 = vpop.permute.xlu0 %2548 }
 0x4cc   : > { %2610 = vrot.lane.b32.xlu1 %v3536_v25, %s3639_s13 }
 0x4d0   : > { %2518 = vrot.lane.b32.xlu1 %v3530_v34, %s3640_s14 }
 0x4d4   : > { %2546 = vrot.lane.b32.xlu1 %v3532_v45, %s3640_s14 }
 0x4d8   : > { %2274 = vrot.lane.b32.xlu1 %v3514_v24, %s3636_s10  ;;  %v2615_v24 = vrot.slane %v4361_v53, 4 }
 0x4dc   : > { %2323 = vrot.lane.b32.xlu1 %v3518_v51, %s3643_s19 }
 0x4e0   : > { %2757 = vperm.xlu1 %3596, %v3392_v40  }
 0x512   : > { %v4363_v46 = vpop.permute.xlu1 %2298 }
 0x514   : > { %v4371_v55 = vpop.permute.xlu0 %2300 }
 0x516   : > { %v2635_v12 = vpop.permute.xlu1 %2634 }
 0x517   : > { %v2638_v29 = vrot.slane %v2635_v12, 4 }
 0x518   : > { %v4377_v43 = vpop.permute.xlu0 %2370 }
 0x519   : > { %v2640_v60 = vsel %vm450_vm1, %v2638_v29, %v2639_v59  ;;  %v2373_v59 = vrot.slane %v4377_v43, 4 }
 0x51a   : > { %v2660_v5 = vpop.permute.xlu1 %2659  ;;  %v2642_v51 = vsel %vm2641_vm12, %v2635_v12, %v2640_v60 }
 0x51b   : > { %v2663_v15 = vrot.slane %v2660_v5, 4 }
 0x51c   : > { %v2435_v20 = vpop.permute.xlu0 %2434 }
 0x51d   : > { %v2665_v28 = vsel %vm450_vm1, %v2663_v15, %v2664_v19 }
 0x51e   : > { %v4369_v13 = vpop.permute.xlu1 %2368  ;;  %v2666_v29 = vsel %vm2641_vm12, %v2660_v5, %v2665_v28 }
 0x51f   : > { %v2372_v53 = vrot.slane %v4369_v13, 4 }
 0x520   : > { %v4383_v27 = vpop.permute.xlu0 %2398 }
 0x522   : > { %v4373_v39 = vpop.permute.xlu1 %2432 }
 0x523   : > { %v2436_v40 = vrot.slane %v4373_v39, 4 }
 0x524   : > { %v2463_v23 = vpop.permute.xlu0 %2462 }
 0x525   : > { %v2465_v5 = vrot.slane %v2463_v23, 4 }
 0x526   : > { %v4375_v56 = vpop.permute.xlu1 %2396 }
 0x527   : > { %v2400_v19 = vrot.slane %v4375_v56, 4 }
 0x52a   : > { %v4379_v58 = vpop.permute.xlu1 %2460 }
 0x52e   : > { %v4381_v62 = vpop.permute.xlu1 %2246 }
 0x532   : > { %v2696_v4 = vpop.permute.xlu1 %2695 }
 0x533   : > { %v2699_v0 = vrot.slane %v2696_v4, 4 }
 0x535   : > { %v2701_v22 = vsel %vm450_vm1, %v2699_v0, %v2700_v26  ;;  %v2437_v26 = vrot.slane %v2435_v20, 4  ;;  %v2249_v0 = vpop.permute.xlu0 %2248 }
 0x536   : > { %v2703_v6 = vsel %vm2227_vm7, %v2696_v4, %v2701_v22  ;;  %v2724_v47 = vpop.permute.xlu1 %2723  ;;  %v2523_v22 = vrot.slane %v4365_v38, 4  ;;  %v2251_v60 = vrot.slane %v2249_v0, 4 }
 0x537   : > { %v3409_v42 = vcombine.low %v2703_v6, %v2703_v6  ;;  %v3410_v37 = vcombine.high %v2703_v6, %v2703_v6  ;;  %v2727_v30 = vrot.slane %v2724_v47, 4  ;;  %v2438_v6 = vsel %vm450_vm1, %v2436_v40, %v2437_v26 }
 0x538   : > { %v2440_v15 = vsel %vm2439_vm10, %v4373_v39, %v2438_v6 }
 0x539   : > { %v2729_v32 = vsel %vm450_vm1, %v2727_v30, %v2728_v36  ;;  %3413 = vmatprep.subr.msk.bf16.mxu0 %vm450_vm1, %v3410_v37  ;;  %v2854_v44 = vsel %vm450_vm1, %v3409_v42, 0  ;;  %v2250_v42 = vrot.slane %v4381_v62, 4  ;;  %v2551_v30 = vrot.slane %v4367_v48, 4 }
 0x53a   : > { %v2730_v25 = vsel %vm2227_vm7, %v2724_v47, %v2729_v32  ;;  %2872 = vmatpush1.bf16.msra.mxu0 %v2854_v44  ;;  %v2583_v16 = vpop.permute.xlu1 %2582  ;;  %v2464_v47 = vrot.slane %v4379_v58, 4  ;;  %v2303_v32 = vrot.slane %v4371_v55, 4  ;;  %v2374_v44 = vsel %vm450_vm1, %v2372_v53, %v2373_v59 }
 0x53b   : > { %v3411_v34 = vcombine.low %v2730_v25, %v2730_v25  ;;  %v3412_v50 = vcombine.high %v2730_v25, %v2730_v25  ;;  %v2586_v54 = vrot.slane %v2583_v16, 4  ;;  %v2252_v23 = vsel %vm450_vm1, %v2250_v42, %v2251_v60 }
 0x53c   : > { %v2466_v48 = vsel %vm450_vm1, %v2464_v47, %v2465_v5 }
 0x53d   : > { %v2588_v45 = vsel %vm450_vm1, %v2586_v54, %v2587_v31  ;;  %3415 = vmatprep.subr.msk.bf16.mxu1 %vm450_vm1, %v3412_v50  ;;  %v2860_v8 = vsel %vm450_vm1, %v3411_v34, 0  ;;  %v2302_v31 = vrot.slane %v4363_v46, 4  ;;  %v2277_v34 = vpop.permute.xlu0 %2276 }
 0x53e   : > { %v2590_v11 = vsel %vm2349_vm5, %v2583_v16, %v2588_v45  ;;  %2913 = vmatpush1.bf16.msra.mxu1 %v2860_v8  ;;  %v2611_v41 = vpop.permute.xlu1 %2610  ;;  %v2401_v16 = vrot.slane %v4383_v27, 4  ;;  %v2376_v27 = vsel %vm2375_vm9, %v4369_v13, %v2374_v44 }
 0x53f   : > { %v3405_v35 = vcombine.low %v2590_v11, %v2642_v51  ;;  %v3406_v9 = vcombine.high %v2590_v11, %v2642_v51  ;;  %v2614_v4 = vrot.slane %v2611_v41, 4  ;;  %v2304_v39 = vsel %vm450_vm1, %v2302_v31, %v2303_v32 }
 0x540   : > { %v2402_v51 = vsel %vm450_vm1, %v2400_v19, %v2401_v16  ;;  %v2467_v11 = vsel %vm2439_vm10, %v4379_v58, %v2466_v48  ;;  %v2306_v58 = vsel %vm2305_vm13, %v4363_v46, %v2304_v39 }
 0x541   : > { %v2616_v12 = vsel %vm450_vm1, %v2614_v4, %v2615_v24  ;;  %2873 = vmatprep.subr.bf16.mxu0 %v3406_v9  ;;  %v3398_v24 = vcombine.high %v2376_v27, %v2440_v15  ;;  %v3397_v4 = vcombine.low %v2376_v27, %v2440_v15  ;;  %v2403_v26 = vsel %vm2375_vm9, %v4375_v56, %v2402_v51  ;;  %v2326_v0 = vpop.permute.xlu0 %2325 }
 0x542   : > { %v2617_v36 = vsel %vm2349_vm5, %v2611_v41, %v2616_v12  ;;  %2874 = vmatpush1.bf16.msra.mxu0 %v3405_v35  ;;  %v2519_v20 = vpop.permute.xlu1 %2518  ;;  %v2254_v41 = vsel %vm2253_vm8, %v4381_v62, %v2252_v23  ;;  %v2279_v62 = vrot.slane %v2277_v34, 4  ;;  %v2328_v12 = vrot.slane %v2326_v0, 4 }
 0x543   : > { %v3407_v38 = vcombine.low %v2617_v36, %v2666_v29  ;;  %v3408_v37 = vcombine.high %v2617_v36, %v2666_v29  ;;  %v2522_v43 = vrot.slane %v2519_v20, 4  ;;  %v3394_v59 = vcombine.high %v2254_v41, %v2306_v58 }
 0x544   : > { %v3399_v6 = vcombine.low %v2403_v26, %v2467_v11  ;;  %v3393_v47 = vcombine.low %v2254_v41, %v2306_v58  ;;  %v3555_v27 = vpack.c.bf16 %v4273_v49, %v4042_v18 }
 0x545   : > { %v2524_v25 = vsel %vm450_vm1, %v2522_v43, %v2523_v22  ;;  %2914 = vmatprep.subr.bf16.mxu1 %v3408_v37  ;;  %v3400_v22 = vcombine.high %v2403_v26, %v2467_v11 }
 0x546   : > { %v2526_v50 = vsel %vm2413_vm6, %v2519_v20, %v2524_v25  ;;  %2915 = vmatpush1.bf16.msra.mxu1 %v3407_v38  ;;  %v2547_v55 = vpop.permute.xlu1 %2546  ;;  %v3391_v20 = vld [vmem:[%s4480_s4 + $0x8] sm:$0xf] }
 0x547   : > { %v3401_v54 = vcombine.low %v4278_v7, %v2526_v50  ;;  %v3402_v45 = vcombine.high %v4278_v7, %v2526_v50  ;;  %v2550_v8 = vrot.slane %v2547_v55, 4 }
 0x549   : > { %v2552_v40 = vsel %vm450_vm1, %v2550_v8, %v2551_v30  ;;  %2875 = vmatprep.subr.bf16.mxu0 %v3402_v45  ;;  %v3552_v45 = vpack.c.bf16 %v4263_v57, %v4032_v52  ;;  %v2977_v52 = vpop.permute.xlu0 %2976 }
 0x54a   : > { %v2553_v7 = vsel %vm2413_vm6, %v2547_v55, %v2552_v40  ;;  %2876 = vmatpush1.bf16.msra.mxu0 %v3401_v54  ;;  %v2275_v28 = vpop.permute.xlu1 %2274 }
 0x54b   : > { %v3403_v13 = vcombine.low %v4289_v1, %v2553_v7  ;;  %v3404_v35 = vcombine.high %v4289_v1, %v2553_v7  ;;  %v2278_v9 = vrot.slane %v2275_v28, 4  ;;  %2877 = vmatprep.subr.bf16.mxu0 %v3398_v24 }
 0x54d   : > { %2916 = vmatprep.subr.bf16.mxu1 %v3404_v35  ;;  %v2280_v1 = vsel %vm450_vm1, %v2278_v9, %v2279_v62 }
 0x54e   : > { %2878 = vmatpush1.bf16.msra.mxu0 %v3397_v4  ;;  %2917 = vmatpush1.bf16.msra.mxu1 %v3403_v13  ;;  %v2324_v53 = vpop.permute.xlu1 %2323  ;;  %v2281_v46 = vsel %vm2253_vm8, %v2275_v28, %v2280_v1 }
 0x54f   : > { %v2327_v29 = vrot.slane %v2324_v53, 4  ;;  %2879 = vmatprep.subr.bf16.mxu0 %v3394_v59  ;;  %2918 = vmatprep.subr.bf16.mxu1 %v3400_v22 }
 0x551   : > { %v2329_v56 = vsel %vm450_vm1, %v2327_v29, %v2328_v12 }
 0x552   : > { %v2330_v36 = vsel %vm2305_vm13, %v2324_v53, %v2329_v56  ;;  %2880 = vmatpush1.bf16.msra.mxu0 %v3393_v47  ;;  %2919 = vmatpush1.bf16.msra.mxu1 %v3399_v6 }
 0x553   : > { %v3395_v42 = vcombine.low %v2281_v46, %v2330_v36  ;;  %v3396_v38 = vcombine.high %v2281_v46, %v2330_v36 }
 0x555   : > { %3414 = vmatmul.mubr.msk.bf16.vlgmr.msra.gmra.mxu0 %vm1333_vm11, %v3391_v20  ;;  %2920 = vmatprep.subr.bf16.mxu1 %v3396_v38 }
 0x556   : > { %2921 = vmatpush1.bf16.msra.mxu1 %v3395_v42  ;;  %3057 = vmatprep.mubr.bf16.mxu0 %v3617_v2 }
 0x559   : > { %3416 = vmatmul.mubr.msk.bf16.vlgmr.msra.gmra.mxu1 %vm1333_vm11, %v3391_v20  ;;  %vm3009_vm11 = vcmask 195584  }
 0x55a   : > { %3098 = vmatprep.mubr.bf16.mxu1 %v3617_v2  ;;  %v3553_v2 = vpack.c.bf16 %v4265_v61, %v4034_v10  ;;  %v2965_v10 = vld [vmem:[%s4481_s5] sm:$0xf]  ;;  %v3554_v61 = vpack.c.bf16 %v4281_v33, %v4050_v17 }
 0x55b   : > { %v2758_v37 = vpop.permute.xlu1 %2757 }
 0x615   : > { %v2899_v43 = vpop.f32.mrf.mxu0 }
 0x616   : > { %v2900_v30 = vadd.f32 %v2899_v43, %v2758_v37 }
 0x617   : > { %v2901_v31 = vpop.f32.mrf.mxu0 }
 0x618   : > { %v3556_v32 = vpack.c.bf16 %v2900_v30, %v2900_v30  ;;  %v2902_v5 = vadd.f32 %v2901_v31, %v2758_v37 }
 0x619   : > { %v2940_v44 = vpop.f32.mrf.mxu1  ;;  %v2903_v19 = vpop.f32.mrf.mxu0 }
 0x61a   : > { %v3557_v60 = vpack.c.bf16 %v2902_v5, %v2902_v5  ;;  %v2941_v25 = vadd.f32 %v2940_v44, %v2758_v37  ;;  %v3014_v48 = vsel %vm450_vm1, %v3556_v32, 0 }
 0x61b   : > { %v2942_v16 = vpop.f32.mrf.mxu1  ;;  %v2904_v15 = vpop.f32.mrf.mxu0 }
 0x61c   : > { %v3558_v34 = vpack.c.bf16 %v2941_v25, %v2941_v25  ;;  %v2943_v50 = vadd.f32 %v2942_v16, %v2758_v37  ;;  %3428 = vmatprep.subr.msk.bf16.mxu0 %vm450_vm1, %v3557_v60 }
 0x61d   : > { %v2944_v55 = vpop.f32.mrf.mxu1  ;;  %3038 = vmatpush1.bf16.msra.mxu0 %v3014_v48 }
 0x61e   : > { %v3559_v23 = vpack.c.bf16 %v2943_v50, %v2943_v50  ;;  %3039 = vmatprep.subr.bf16.mxu0 %v3553_v2  ;;  %v3020_v8 = vsel %vm450_vm1, %v3558_v34, 0 }
 0x61f   : > { %v2945_v54 = vpop.f32.mrf.mxu1 }
 0x620   : > { %3430 = vmatprep.subr.msk.bf16.mxu1 %vm450_vm1, %v3559_v23 }
 0x621   : > { %3040 = vmatpush1.bf16.msra.mxu0 %v3552_v45  ;;  %3079 = vmatpush1.bf16.msra.mxu1 %v3020_v8 }
 0x622   : > { %3080 = vmatprep.subr.bf16.mxu1 %v3555_v27 }
 0x624   : > { %3429 = vmatmul.mubr.msk.bf16.vlgmr.msra.gmra.mxu0 %vm3009_vm11, %v2965_v10 }
 0x625   : > { %3081 = vmatpush1.bf16.msra.mxu1 %v3554_v61 }
 0x628   : > { %3431 = vmatmul.mubr.msk.bf16.vlgmr.msra.gmra.mxu1 %vm3009_vm11, %v2965_v10 }
 0x6e4   : > { %v3059_v57 = vpop.f32.mrf.mxu0 }
 0x6e5   : > { %v3060_v39 = vadd.f32 %v3059_v57, %v2977_v52 }
 0x6e6   : > { %v3061_v18 = vpop.f32.mrf.mxu0 }
 0x6e7   : > { %v3107_v49 = vadd.f32 %v3060_v39, %v3804_v63  ;;  %v3062_v24 = vadd.f32 %v3061_v18, %v2977_v52 }
 0x6e8   : > { %v3100_v51 = vpop.f32.mrf.mxu1  ;;  %v3063_v40 = vpop.f32.mrf.mxu0 }
 0x6e9   : > { %3111 = vst [vmem:[%s334_s11] sm:$0xff] %v3107_v49  ;;  %v3108_v17 = vadd.f32 %v3062_v24, %v3806_v3  ;;  %v3101_v33 = vadd.f32 %v3100_v51, %v2977_v52 }
 0x6ea   : > { %v3102_v11 = vpop.f32.mrf.mxu1  ;;  %v3064_v41 = vpop.f32.mrf.mxu0 }
 0x6eb   : > { %3112 = vst [vmem:[%s334_s11 + $0x8] sm:$0xff] %v3108_v17  ;;  %v3109_v7 = vadd.f32 %v3101_v33, %v3823_v21  ;;  %v3103_v28 = vadd.f32 %v3102_v11, %v2977_v52 }
 0x6ec   : > { %v3104_v13 = vpop.f32.mrf.mxu1 }
 0x6ed   : > { %3432 = vst [vmem:[%s334_s11 + $0x10] sm:$0xff] %v3109_v7  ;;  %v3110_v35 = vadd.f32 %v3103_v28, %v3815_v14 }
 0x6ee   : > { %v3105_v9 = vpop.f32.mrf.mxu1 }
 0x6ef   : > { %3433 = vst [vmem:[%s334_s11 + $0x18] sm:$0xff] %v3110_v35 }
 0x6f0 PF: > { %s18_s27 = sadd.s32 1, %s3615_s27  }
 0x6f1   : > { %p15_p4 = scmp.ge.s32.totalorder %s18_s27, 4  }
 0x6f3   :  { %17 = sbr.rel (!%p15_p4) target bundleno = 1 (0x1), region = 99 }

</bundles_post_ra>
